<compile_context>
chip_gen: v7x
topology: tpu7x:2x2x1
jax: 0.10.0
libtpu: 0.0.40
codegen_flags: <defaults>
</compile_context>

<pallas_src>
import functools
import math

import numpy as np
import jax
import jax.numpy as jnp
from jax.experimental import pallas as pl
from jax.experimental.pallas import tpu as pltpu

DISP_SCALE = 3.0  # stand-in disparity magnitude (keeps sampling mostly in-bounds)

# ---------------------------------------------------------------------------
# Deterministic stand-in parameters.
# TODO(synk): real PSMNet / AHDRNet internals are not given in the reference
# snippet; they are replaced by deterministic per-pixel 1x1-conv stand-ins.
# ---------------------------------------------------------------------------
_rng = np.random.RandomState(0)
C_IMG = 3
W_DISP = (_rng.randn(3, C_IMG) * 0.5).astype(np.float32)           # 3 disparity heads
B_DISP = (_rng.randn(3) * 0.1).astype(np.float32)
W_ATT_L = (_rng.randn(2 * C_IMG, 2 * C_IMG) * 0.3).astype(np.float32)
W_ATT_R = (_rng.randn(2 * C_IMG, 2 * C_IMG) * 0.3).astype(np.float32)
W_RES = (_rng.randn(C_IMG, 2 * C_IMG) * 0.3).astype(np.float32)


def _sigmoid(x):
    # Same closed form in kernel and reference (avoids lax.logistic lowering).
    return 1.0 / (1.0 + jnp.exp(-x))


def _make_warp_consts(H, W):
    """Batch-invariant warp constants, computed once host-side.

    Rows: [w_self, w_prev, w_next, wcol] flattened to length H*W
    (flattened index = h*W + w).  Vertical bilinear weights follow
    grid_sample align_corners=False with zero padding: for output row h the
    source rows are iy0 in {h-1, h} and iy0+1.
    """
    hh = np.arange(H, dtype=np.float32)
    iy = hh * np.float32(H / (H - 1.0)) - np.float32(0.5)
    iy0 = np.floor(iy)
    wy1 = iy - iy0
    wy0 = 1.0 - wy1
    w_self = np.where(iy0 == hh, wy0, wy1)                       # weight of row h
    w_prev = np.where((iy0 == hh - 1.0) & (hh >= 1), wy0, 0.0)   # weight of row h-1
    w_next = np.where((iy0 == hh) & (hh <= H - 2), wy1, 0.0)     # weight of row h+1
    w_self = np.repeat(w_self, W)
    w_prev = np.repeat(w_prev, W)
    w_next = np.repeat(w_next, W)
    wcol = np.tile(np.arange(W, dtype=np.float32), H)
    return np.stack([w_self, w_prev, w_next, wcol], axis=0).astype(np.float32)


# ---------------------------------------------------------------------------
# Fused kernel: disparity stand-in + 2 warps + fusion stand-in, one batch
# element per grid step.  All arrays are (channels, H*W) in VMEM.
# ---------------------------------------------------------------------------
def _mvmef_kernel(const_ref, ld_ref, rd_ref, lg_ref, rg_ref, lo_ref, ro_ref,
                  p1_ref, p2_ref, p3_ref, wo_ref, res_ref, amap_ref,
                  *, C, H, W, shifts):
    f32 = jnp.float32
    HW = H * W
    C2 = 2 * C

    def lane_roll(x, s):                      # y[..., i] = x[..., i + s]  (circular)
        s = (-s) % HW
        return x if s == 0 else pltpu.roll(x, s, axis=1)

    cst = const_ref[...]                      # (4, HW) f32
    w_self = cst[0:1]
    w_prev = cst[1:2]
    w_next = cst[2:3]
    wcol_f = cst[3:4]
    wcol_i = wcol_f.astype(jnp.int32)

    # ---- disparity stand-in ("PSMNet"): 1x1 conv over (L - R) diff ----
    diff = ld_ref[...].astype(f32) - rd_ref[...].astype(f32)     # (C, HW)
    preds = []
    for k in range(3):
        acc = jnp.full((1, HW), float(B_DISP[k]), f32)
        for c in range(C):
            acc = acc + float(W_DISP[k, c]) * diff[c:c + 1]
        preds.append(_sigmoid(acc) * DISP_SCALE)
    p1_ref[...] = preds[0].astype(p1_ref.dtype)
    p2_ref[...] = preds[1].astype(p2_ref.dtype)
    p3_ref[...] = preds[2].astype(p3_ref.dtype)
    disp = preds[2]                                              # (1, HW)

    # ---- shared horizontal sampling weights (computed once for both warps) ----
    # unnormalized x coord, align_corners=False: ix = (w + d) * W/(W-1) - 0.5
    ix = (wcol_f + disp) * (W / (W - 1.0)) - 0.5
    ix0f = jnp.floor(ix)
    wx1 = ix - ix0f
    wx0 = 1.0 - wx1
    ix0i = ix0f.astype(jnp.int32)
    ix1i = ix0i + 1
    # zero padding: out-of-range source columns get zero weight
    w0 = jnp.where((ix0i >= 0) & (ix0i <= W - 1), wx0, 0.0)
    w1 = jnp.where((ix1i >= 0) & (ix1i <= W - 1), wx1, 0.0)
    rel = ix0i - wcol_i                       # source-column offset, bounded by shifts
    hw_weights = [jnp.where(rel == s, w0, 0.0) + jnp.where(rel == (s - 1), w1, 0.0)
                  for s in shifts]
    # NOTE: weights also mask the circular-wrap lanes of the rolls below, since a
    # wrapped lane only appears when the source column index leaves [0, W-1].

    def do_warp(img_ref):
        img = img_ref[...].astype(f32)                            # (C, HW)
        # vertical 2-band blend: rows h-1 / h / h+1 via +/- one-row lane rolls
        rb = (w_self * img
              + w_prev * lane_roll(img, -W)
              + w_next * lane_roll(img, W))
        out = jnp.zeros_like(rb)
        for s, hw in zip(shifts, hw_weights):                     # bounded-shift gather
            out = out + hw * lane_roll(rb, s)
        return out

    wo = do_warp(lo_ref)                                          # warp(imgL_o, pred3)
    wg = do_warp(lg_ref)                                          # warp(imgL_g, pred3)
    wo_ref[...] = wo.astype(wo_ref.dtype)

    # ---- fusion stand-in ("AHDRNet"): sigmoid attention + 1x1 merge ----
    ro = ro_ref[...].astype(f32)
    rg = rg_ref[...].astype(f32)
    Lc = [wo[c:c + 1] for c in range(C)] + [wg[c:c + 1] for c in range(C)]
    Rc = [ro[c:c + 1] for c in range(C)] + [rg[c:c + 1] for c in range(C)]

    a = []
    for o in range(C2):
        acc = jnp.zeros((1, HW), f32)
        for c in range(C2):
            acc = acc + float(W_ATT_L[o, c]) * Lc[c] + float(W_ATT_R[o, c]) * Rc[c]
        ao = _sigmoid(acc)
        a.append(ao)
        amap_ref[o:o + 1, :] = ao.astype(amap_ref.dtype)

    merged = [a[c] * Lc[c] + (1.0 - a[c]) * Rc[c] for c in range(C2)]
    for o in range(C):
        acc = jnp.zeros((1, HW), f32)
        for c in range(C2):
            acc = acc + float(W_RES[o, c]) * merged[c]
        res_ref[o:o + 1, :] = acc.astype(res_ref.dtype)


# ---------------------------------------------------------------------------
# Full MVMEFNet forward (single fused pallas_call; wrapper only reshapes).
# ---------------------------------------------------------------------------
def mvmefnet_forward(imgL_d, imgR_d, imgL_g, imgR_g, imgL_o, imgR_o):
    B, C, H, W = imgL_d.shape
    assert C == C_IMG and H > 1 and W > 1
    HW = H * W
    dtype = imgL_d.dtype

    # Lane-dense layout: (B, C, H*W); reshape of trailing contiguous dims is free.
    flat = lambda x: x.reshape(B, x.shape[1], HW)
    inputs = [flat(x) for x in (imgL_d, imgR_d, imgL_g, imgR_g, imgL_o, imgR_o)]

    const = jnp.asarray(_make_warp_consts(H, W))                 # (4, HW)

    # Disparity (sigmoid * DISP_SCALE) is bounded -> only a few source columns
    # can contribute to each output pixel.
    # TODO(synk): for a real PSMNet max_disp (e.g. 370) this bounded-shift gather
    # is not viable; switch to an MXU one-hot matmul or a DMA gather instead.
    max_shift = 1 + int(math.ceil(0.5 + DISP_SCALE * W / (W - 1.0)))
    shifts = tuple(range(-1, max_shift + 1))

    kernel = functools.partial(_mvmef_kernel, C=C, H=H, W=W, shifts=shifts)

    img_spec = pl.BlockSpec((pl.Squeezed(), C, HW), lambda b: (b, 0, 0))
    disp_spec = pl.BlockSpec((pl.Squeezed(), 1, HW), lambda b: (b, 0, 0))
    amap_spec = pl.BlockSpec((pl.Squeezed(), 2 * C, HW), lambda b: (b, 0, 0))
    const_spec = pl.BlockSpec((4, HW), lambda b: (0, 0))

    out_shapes = (
        jax.ShapeDtypeStruct((B, 1, HW), dtype),        # pred1
        jax.ShapeDtypeStruct((B, 1, HW), dtype),        # pred2
        jax.ShapeDtypeStruct((B, 1, HW), dtype),        # pred3
        jax.ShapeDtypeStruct((B, C, HW), dtype),        # w_imgL_o
        jax.ShapeDtypeStruct((B, C, HW), dtype),        # result
        jax.ShapeDtypeStruct((B, 2 * C, HW), dtype),    # a_map
    )
    out_specs = (disp_spec, disp_spec, disp_spec, img_spec, img_spec, amap_spec)

    p1, p2, p3, wo, result, amap = pl.pallas_call(
        kernel,
        out_shape=out_shapes,
        grid=(B,),
        in_specs=[const_spec] + [img_spec] * 6,
        out_specs=out_specs,
        compiler_params=pltpu.CompilerParams(
            dimension_semantics=("parallel",),
            vmem_limit_bytes=32 * 1024 * 1024),
    )(const, *inputs)

    return (p1.reshape(B, H, W), p2.reshape(B, H, W), p3.reshape(B, H, W),
            wo.reshape(B, C, H, W), result.reshape(B, C, H, W),
            amap.reshape(B, 2 * C, H, W))


# ---------------------------------------------------------------------------
# Plain-JAX references (used only for verification in __main__).
# ---------------------------------------------------------------------------
def warp_reference(image, disp):
    """F.grid_sample(bilinear, zeros, align_corners=False) with x-only shift."""
    B, C, H, W = image.shape
    hh = jnp.arange(H, dtype=jnp.float32)[:, None]
    ww = jnp.arange(W, dtype=jnp.float32)[None, :]
    iy = jnp.broadcast_to(hh * (H / (H - 1.0)) - 0.5, (H, W))

    def one(img, d):
        ix = (ww + d) * (W / (W - 1.0)) - 0.5
        ix0 = jnp.floor(ix)
        iy0 = jnp.floor(iy)
        wy1 = iy - iy0
        wx1 = ix - ix0

        def corner(yi, xi, wgt):
            valid = (yi >= 0) & (yi <= H - 1) & (xi >= 0) & (xi <= W - 1)
            yic = jnp.clip(yi, 0, H - 1).astype(jnp.int32)
            xic = jnp.clip(xi, 0, W - 1).astype(jnp.int32)
            return img[:, yic, xic] * (wgt * valid)[None]

        return (corner(iy0, ix0, (1 - wy1) * (1 - wx1))
                + corner(iy0, ix0 + 1.0, (1 - wy1) * wx1)
                + corner(iy0 + 1.0, ix0, wy1 * (1 - wx1))
                + corner(iy0 + 1.0, ix0 + 1.0, wy1 * wx1))

    return jax.vmap(one)(image, disp)


def forward_reference(imgL_d, imgR_d, imgL_g, imgR_g, imgL_o, imgR_o):
    hi = jax.lax.Precision.HIGHEST
    Wd, Bd = jnp.asarray(W_DISP), jnp.asarray(B_DISP)
    lin = jnp.einsum('kc,bchw->bkhw', Wd, imgL_d - imgR_d, precision=hi)
    preds = _sigmoid(lin + Bd[None, :, None, None]) * DISP_SCALE
    pred1, pred2, pred3 = preds[:, 0], preds[:, 1], preds[:, 2]
    wo = warp_reference(imgL_o, pred3)
    wg = warp_reference(imgL_g, pred3)
    L = jnp.concatenate([wo, wg], axis=1)
    R = jnp.concatenate([imgR_o, imgR_g], axis=1)
    WAL, WAR, WR = jnp.asarray(W_ATT_L), jnp.asarray(W_ATT_R), jnp.asarray(W_RES)
    att = _sigmoid(jnp.einsum('oc,bchw->bohw', WAL, L, precision=hi)
                   + jnp.einsum('oc,bchw->bohw', WAR, R, precision=hi))
    merged = att * L + (1.0 - att) * R
    result = jnp.einsum('oc,bchw->bohw', WR, merged, precision=hi)
    return pred1, pred2, pred3, wo, result, att


if __name__ == "__main__":
    B, C, H, W = 2, 3, 16, 16
    key = jax.random.PRNGKey(0)
    ks = jax.random.split(key, 6)
    imgL_d, imgR_d, imgL_g, imgR_g, imgL_o, imgR_o = [
        jax.random.uniform(k, (B, C, H, W), dtype=jnp.float32) for k in ks]

    fwd = jax.jit(mvmefnet_forward)
    outs = jax.block_until_ready(fwd(imgL_d, imgR_d, imgL_g, imgR_g, imgL_o, imgR_o))
    pred1, pred2, pred3, w_imgL_o, result, a_map = outs

    assert pred1.shape == (B, H, W) and pred2.shape == (B, H, W) and pred3.shape == (B, H, W)
    assert w_imgL_o.shape == (B, C, H, W)
    assert result.shape == (B, C, H, W)
    assert a_map.shape == (B, 2 * C, H, W)

    # Verify the whole fused kernel against the plain-JAX reference forward.
    refs = forward_reference(imgL_d, imgR_d, imgL_g, imgR_g, imgL_o, imgR_o)
    for got, ref in zip(outs, refs):
        np.testing.assert_allclose(np.asarray(got), np.asarray(ref),
                                   rtol=1e-3, atol=1e-3)

    print("KERNEL_OK")
</pallas_src>

<mosaic_0001>
module attributes {stable_mosaic.version = 11 : i64} {
  func.func @_mvmef_kernel(%arg0: i32, %arg1: memref<4x256xf32, #tpu.memory_space<vmem>>, %arg2: memref<1x3x256xf32, #tpu.memory_space<vmem>>, %arg3: memref<1x3x256xf32, #tpu.memory_space<vmem>>, %arg4: memref<1x3x256xf32, #tpu.memory_space<vmem>>, %arg5: memref<1x3x256xf32, #tpu.memory_space<vmem>>, %arg6: memref<1x3x256xf32, #tpu.memory_space<vmem>>, %arg7: memref<1x3x256xf32, #tpu.memory_space<vmem>>, %arg8: memref<1x1x256xf32, #tpu.memory_space<vmem>>, %arg9: memref<1x1x256xf32, #tpu.memory_space<vmem>>, %arg10: memref<1x1x256xf32, #tpu.memory_space<vmem>>, %arg11: memref<1x3x256xf32, #tpu.memory_space<vmem>>, %arg12: memref<1x3x256xf32, #tpu.memory_space<vmem>>, %arg13: memref<1x6x256xf32, #tpu.memory_space<vmem>>) attributes {dimension_semantics = [#tpu.dimension_semantics<parallel>], iteration_bounds = array<i64: 2>, scalar_prefetch = 0 : i64, scratch_operands = 0 : i64, tpu.core_type = #tpu.core_type<tc>, window_params = [{pipeline_mode = #tpu.pipeline_mode<synchronous>, transform_indices = @transform_0, window_bounds = array<i64: 4, 256>}, {transform_indices = @transform_1, window_bounds = array<i64: 1, 3, 256>}, {transform_indices = @transform_2, window_bounds = array<i64: 1, 3, 256>}, {transform_indices = @transform_3, window_bounds = array<i64: 1, 3, 256>}, {transform_indices = @transform_4, window_bounds = array<i64: 1, 3, 256>}, {transform_indices = @transform_5, window_bounds = array<i64: 1, 3, 256>}, {transform_indices = @transform_6, window_bounds = array<i64: 1, 3, 256>}, {transform_indices = @transform_7, window_bounds = array<i64: 1, 1, 256>}, {transform_indices = @transform_8, window_bounds = array<i64: 1, 1, 256>}, {transform_indices = @transform_9, window_bounds = array<i64: 1, 1, 256>}, {transform_indices = @transform_10, window_bounds = array<i64: 1, 3, 256>}, {transform_indices = @transform_11, window_bounds = array<i64: 1, 3, 256>}, {transform_indices = @transform_12, window_bounds = array<i64: 1, 6, 256>}]} {
    %c0 = arith.constant 0 : index
    %c0_0 = arith.constant 0 : index
    %0 = vector.load %arg1[%c0, %c0_0] : memref<4x256xf32, #tpu.memory_space<vmem>>, vector<4x256xf32>
    %1 = vector.extract_strided_slice %0 {offsets = [0, 0], sizes = [1, 256], strides = [1, 1]} : vector<4x256xf32> to vector<1x256xf32>
    %2 = vector.extract_strided_slice %0 {offsets = [1, 0], sizes = [1, 256], strides = [1, 1]} : vector<4x256xf32> to vector<1x256xf32>
    %3 = vector.extract_strided_slice %0 {offsets = [2, 0], sizes = [1, 256], strides = [1, 1]} : vector<4x256xf32> to vector<1x256xf32>
    %4 = vector.extract_strided_slice %0 {offsets = [3, 0], sizes = [1, 256], strides = [1, 1]} : vector<4x256xf32> to vector<1x256xf32>
    %5 = arith.fptosi %4 : vector<1x256xf32> to vector<1x256xi32>
    %c0_1 = arith.constant 0 : index
    %c0_2 = arith.constant 0 : index
    %c0_3 = arith.constant 0 : index
    %6 = vector.load %arg2[%c0_1, %c0_2, %c0_3] : memref<1x3x256xf32, #tpu.memory_space<vmem>>, vector<1x3x256xf32>
    %7 = vector.shape_cast %6 : vector<1x3x256xf32> to vector<3x256xf32>
    %c0_4 = arith.constant 0 : index
    %c0_5 = arith.constant 0 : index
    %c0_6 = arith.constant 0 : index
    %8 = vector.load %arg3[%c0_4, %c0_5, %c0_6] : memref<1x3x256xf32, #tpu.memory_space<vmem>>, vector<1x3x256xf32>
    %9 = vector.shape_cast %8 : vector<1x3x256xf32> to vector<3x256xf32>
    %10 = arith.subf %7, %9 : vector<3x256xf32>
    %cst = arith.constant 0.0410598516 : f32
    %11 = vector.broadcast %cst : f32 to vector<1x256xf32>
    %12 = vector.extract_strided_slice %10 {offsets = [0, 0], sizes = [1, 256], strides = [1, 1]} : vector<3x256xf32> to vector<1x256xf32>
    %cst_7 = arith.constant 0.882026195 : f32
    %13 = vector.broadcast %cst_7 : f32 to vector<1x256xf32>
    %14 = arith.mulf %13, %12 : vector<1x256xf32>
    %15 = arith.addf %11, %14 : vector<1x256xf32>
    %16 = vector.extract_strided_slice %10 {offsets = [1, 0], sizes = [1, 256], strides = [1, 1]} : vector<3x256xf32> to vector<1x256xf32>
    %cst_8 = arith.constant 0.200078607 : f32
    %17 = vector.broadcast %cst_8 : f32 to vector<1x256xf32>
    %18 = arith.mulf %17, %16 : vector<1x256xf32>
    %19 = arith.addf %15, %18 : vector<1x256xf32>
    %20 = vector.extract_strided_slice %10 {offsets = [2, 0], sizes = [1, 256], strides = [1, 1]} : vector<3x256xf32> to vector<1x256xf32>
    %cst_9 = arith.constant 4.893690e-01 : f32
    %21 = vector.broadcast %cst_9 : f32 to vector<1x256xf32>
    %22 = arith.mulf %21, %20 : vector<1x256xf32>
    %23 = arith.addf %19, %22 : vector<1x256xf32>
    %cst_10 = arith.constant 0.000000e+00 : f32
    %24 = vector.broadcast %cst_10 : f32 to vector<1x256xf32>
    %25 = arith.subf %24, %23 : vector<1x256xf32>
    %26 = math.exp %25 : vector<1x256xf32>
    %cst_11 = arith.constant 1.000000e+00 : f32
    %27 = vector.broadcast %cst_11 : f32 to vector<1x256xf32>
    %28 = arith.addf %27, %26 : vector<1x256xf32>
    %cst_12 = arith.constant 1.000000e+00 : f32
    %29 = vector.broadcast %cst_12 : f32 to vector<1x256xf32>
    %30 = arith.divf %29, %28 : vector<1x256xf32>
    %cst_13 = arith.constant 3.000000e+00 : f32
    %31 = vector.broadcast %cst_13 : f32 to vector<1x256xf32>
    %32 = arith.mulf %30, %31 : vector<1x256xf32>
    %cst_14 = arith.constant 0.0144043574 : f32
    %33 = vector.broadcast %cst_14 : f32 to vector<1x256xf32>
    %34 = vector.extract_strided_slice %10 {offsets = [0, 0], sizes = [1, 256], strides = [1, 1]} : vector<3x256xf32> to vector<1x256xf32>
    %cst_15 = arith.constant 1.12044656 : f32
    %35 = vector.broadcast %cst_15 : f32 to vector<1x256xf32>
    %36 = arith.mulf %35, %34 : vector<1x256xf32>
    %37 = arith.addf %33, %36 : vector<1x256xf32>
    %38 = vector.extract_strided_slice %10 {offsets = [1, 0], sizes = [1, 256], strides = [1, 1]} : vector<3x256xf32> to vector<1x256xf32>
    %cst_16 = arith.constant 9.337790e-01 : f32
    %39 = vector.broadcast %cst_16 : f32 to vector<1x256xf32>
    %40 = arith.mulf %39, %38 : vector<1x256xf32>
    %41 = arith.addf %37, %40 : vector<1x256xf32>
    %42 = vector.extract_strided_slice %10 {offsets = [2, 0], sizes = [1, 256], strides = [1, 1]} : vector<3x256xf32> to vector<1x256xf32>
    %cst_17 = arith.constant -0.488638937 : f32
    %43 = vector.broadcast %cst_17 : f32 to vector<1x256xf32>
    %44 = arith.mulf %43, %42 : vector<1x256xf32>
    %45 = arith.addf %41, %44 : vector<1x256xf32>
    %cst_18 = arith.constant 0.000000e+00 : f32
    %46 = vector.broadcast %cst_18 : f32 to vector<1x256xf32>
    %47 = arith.subf %46, %45 : vector<1x256xf32>
    %48 = math.exp %47 : vector<1x256xf32>
    %cst_19 = arith.constant 1.000000e+00 : f32
    %49 = vector.broadcast %cst_19 : f32 to vector<1x256xf32>
    %50 = arith.addf %49, %48 : vector<1x256xf32>
    %cst_20 = arith.constant 1.000000e+00 : f32
    %51 = vector.broadcast %cst_20 : f32 to vector<1x256xf32>
    %52 = arith.divf %51, %50 : vector<1x256xf32>
    %cst_21 = arith.constant 3.000000e+00 : f32
    %53 = vector.broadcast %cst_21 : f32 to vector<1x256xf32>
    %54 = arith.mulf %52, %53 : vector<1x256xf32>
    %cst_22 = arith.constant 0.145427346 : f32
    %55 = vector.broadcast %cst_22 : f32 to vector<1x256xf32>
    %56 = vector.extract_strided_slice %10 {offsets = [0, 0], sizes = [1, 256], strides = [1, 1]} : vector<3x256xf32> to vector<1x256xf32>
    %cst_23 = arith.constant 0.475044221 : f32
    %57 = vector.broadcast %cst_23 : f32 to vector<1x256xf32>
    %58 = arith.mulf %57, %56 : vector<1x256xf32>
    %59 = arith.addf %55, %58 : vector<1x256xf32>
    %60 = vector.extract_strided_slice %10 {offsets = [1, 0], sizes = [1, 256], strides = [1, 1]} : vector<3x256xf32> to vector<1x256xf32>
    %cst_24 = arith.constant -7.567860e-02 : f32
    %61 = vector.broadcast %cst_24 : f32 to vector<1x256xf32>
    %62 = arith.mulf %61, %60 : vector<1x256xf32>
    %63 = arith.addf %59, %62 : vector<1x256xf32>
    %64 = vector.extract_strided_slice %10 {offsets = [2, 0], sizes = [1, 256], strides = [1, 1]} : vector<3x256xf32> to vector<1x256xf32>
    %cst_25 = arith.constant -0.0516094267 : f32
    %65 = vector.broadcast %cst_25 : f32 to vector<1x256xf32>
    %66 = arith.mulf %65, %64 : vector<1x256xf32>
    %67 = arith.addf %63, %66 : vector<1x256xf32>
    %cst_26 = arith.constant 0.000000e+00 : f32
    %68 = vector.broadcast %cst_26 : f32 to vector<1x256xf32>
    %69 = arith.subf %68, %67 : vector<1x256xf32>
    %70 = math.exp %69 : vector<1x256xf32>
    %cst_27 = arith.constant 1.000000e+00 : f32
    %71 = vector.broadcast %cst_27 : f32 to vector<1x256xf32>
    %72 = arith.addf %71, %70 : vector<1x256xf32>
    %cst_28 = arith.constant 1.000000e+00 : f32
    %73 = vector.broadcast %cst_28 : f32 to vector<1x256xf32>
    %74 = arith.divf %73, %72 : vector<1x256xf32>
    %cst_29 = arith.constant 3.000000e+00 : f32
    %75 = vector.broadcast %cst_29 : f32 to vector<1x256xf32>
    %76 = arith.mulf %74, %75 : vector<1x256xf32>
    %c0_30 = arith.constant 0 : index
    %c0_31 = arith.constant 0 : index
    %c0_32 = arith.constant 0 : index
    %77 = vector.load %arg8[%c0_30, %c0_31, %c0_32] : memref<1x1x256xf32, #tpu.memory_space<vmem>>, vector<1x1x256xf32>
    %78 = vector.shape_cast %77 : vector<1x1x256xf32> to vector<1x256xf32>
    %79 = vector.shape_cast %32 : vector<1x256xf32> to vector<1x1x256xf32>
    tpu.vector_store %arg8[%c0_30, %c0_31, %c0_32], %79 {strides = array<i32>} : memref<1x1x256xf32, #tpu.memory_space<vmem>>, vector<1x1x256xf32>,
    %c0_33 = arith.constant 0 : index
    %c0_34 = arith.constant 0 : index
    %c0_35 = arith.constant 0 : index
    %80 = vector.load %arg9[%c0_33, %c0_34, %c0_35] : memref<1x1x256xf32, #tpu.memory_space<vmem>>, vector<1x1x256xf32>
    %81 = vector.shape_cast %80 : vector<1x1x256xf32> to vector<1x256xf32>
    %82 = vector.shape_cast %54 : vector<1x256xf32> to vector<1x1x256xf32>
    tpu.vector_store %arg9[%c0_33, %c0_34, %c0_35], %82 {strides = array<i32>} : memref<1x1x256xf32, #tpu.memory_space<vmem>>, vector<1x1x256xf32>,
    %c0_36 = arith.constant 0 : index
    %c0_37 = arith.constant 0 : index
    %c0_38 = arith.constant 0 : index
    %83 = vector.load %arg10[%c0_36, %c0_37, %c0_38] : memref<1x1x256xf32, #tpu.memory_space<vmem>>, vector<1x1x256xf32>
    %84 = vector.shape_cast %83 : vector<1x1x256xf32> to vector<1x256xf32>
    %85 = vector.shape_cast %76 : vector<1x256xf32> to vector<1x1x256xf32>
    tpu.vector_store %arg10[%c0_36, %c0_37, %c0_38], %85 {strides = array<i32>} : memref<1x1x256xf32, #tpu.memory_space<vmem>>, vector<1x1x256xf32>,
    %86 = arith.addf %4, %76 : vector<1x256xf32>
    %cst_39 = arith.constant 1.06666672 : f32
    %87 = vector.broadcast %cst_39 : f32 to vector<1x256xf32>
    %88 = arith.mulf %86, %87 : vector<1x256xf32>
    %cst_40 = arith.constant 5.000000e-01 : f32
    %89 = vector.broadcast %cst_40 : f32 to vector<1x256xf32>
    %90 = arith.subf %88, %89 : vector<1x256xf32>
    %91 = math.floor %90 : vector<1x256xf32>
    %92 = arith.subf %90, %91 : vector<1x256xf32>
    %cst_41 = arith.constant 1.000000e+00 : f32
    %93 = vector.broadcast %cst_41 : f32 to vector<1x256xf32>
    %94 = arith.subf %93, %92 : vector<1x256xf32>
    %95 = arith.fptosi %91 : vector<1x256xf32> to vector<1x256xi32>
    %c1_i32 = arith.constant 1 : i32
    %96 = vector.broadcast %c1_i32 : i32 to vector<1x256xi32>
    %97 = arith.addi %95, %96 : vector<1x256xi32>
    %c0_i32 = arith.constant 0 : i32
    %98 = vector.broadcast %c0_i32 : i32 to vector<1x256xi32>
    %99 = arith.cmpi sge, %95, %98 : vector<1x256xi32>
    %c15_i32 = arith.constant 15 : i32
    %100 = vector.broadcast %c15_i32 : i32 to vector<1x256xi32>
    %101 = arith.cmpi sle, %95, %100 : vector<1x256xi32>
    %102 = arith.andi %99, %101 : vector<1x256xi1>
    %cst_42 = arith.constant 0.000000e+00 : f32
    %103 = vector.broadcast %cst_42 : f32 to vector<1x256xf32>
    %104 = arith.select %102, %94, %103 : vector<1x256xi1>, vector<1x256xf32>
    %c0_i32_43 = arith.constant 0 : i32
    %105 = vector.broadcast %c0_i32_43 : i32 to vector<1x256xi32>
    %106 = arith.cmpi sge, %97, %105 : vector<1x256xi32>
    %c15_i32_44 = arith.constant 15 : i32
    %107 = vector.broadcast %c15_i32_44 : i32 to vector<1x256xi32>
    %108 = arith.cmpi sle, %97, %107 : vector<1x256xi32>
    %109 = arith.andi %106, %108 : vector<1x256xi1>
    %cst_45 = arith.constant 0.000000e+00 : f32
    %110 = vector.broadcast %cst_45 : f32 to vector<1x256xf32>
    %111 = arith.select %109, %92, %110 : vector<1x256xi1>, vector<1x256xf32>
    %112 = arith.subi %95, %5 : vector<1x256xi32>
    %c-1_i32 = arith.constant -1 : i32
    %113 = vector.broadcast %c-1_i32 : i32 to vector<1x256xi32>
    %114 = arith.cmpi eq, %112, %113 : vector<1x256xi32>
    %cst_46 = arith.constant 0.000000e+00 : f32
    %115 = vector.broadcast %cst_46 : f32 to vector<1x256xf32>
    %116 = arith.select %114, %104, %115 : vector<1x256xi1>, vector<1x256xf32>
    %c-2_i32 = arith.constant -2 : i32
    %117 = vector.broadcast %c-2_i32 : i32 to vector<1x256xi32>
    %118 = arith.cmpi eq, %112, %117 : vector<1x256xi32>
    %cst_47 = arith.constant 0.000000e+00 : f32
    %119 = vector.broadcast %cst_47 : f32 to vector<1x256xf32>
    %120 = arith.select %118, %111, %119 : vector<1x256xi1>, vector<1x256xf32>
    %121 = arith.addf %116, %120 : vector<1x256xf32>
    %c0_i32_48 = arith.constant 0 : i32
    %122 = vector.broadcast %c0_i32_48 : i32 to vector<1x256xi32>
    %123 = arith.cmpi eq, %112, %122 : vector<1x256xi32>
    %cst_49 = arith.constant 0.000000e+00 : f32
    %124 = vector.broadcast %cst_49 : f32 to vector<1x256xf32>
    %125 = arith.select %123, %104, %124 : vector<1x256xi1>, vector<1x256xf32>
    %c-1_i32_50 = arith.constant -1 : i32
    %126 = vector.broadcast %c-1_i32_50 : i32 to vector<1x256xi32>
    %127 = arith.cmpi eq, %112, %126 : vector<1x256xi32>
    %cst_51 = arith.constant 0.000000e+00 : f32
    %128 = vector.broadcast %cst_51 : f32 to vector<1x256xf32>
    %129 = arith.select %127, %111, %128 : vector<1x256xi1>, vector<1x256xf32>
    %130 = arith.addf %125, %129 : vector<1x256xf32>
    %c1_i32_52 = arith.constant 1 : i32
    %131 = vector.broadcast %c1_i32_52 : i32 to vector<1x256xi32>
    %132 = arith.cmpi eq, %112, %131 : vector<1x256xi32>
    %cst_53 = arith.constant 0.000000e+00 : f32
    %133 = vector.broadcast %cst_53 : f32 to vector<1x256xf32>
    %134 = arith.select %132, %104, %133 : vector<1x256xi1>, vector<1x256xf32>
    %c0_i32_54 = arith.constant 0 : i32
    %135 = vector.broadcast %c0_i32_54 : i32 to vector<1x256xi32>
    %136 = arith.cmpi eq, %112, %135 : vector<1x256xi32>
    %cst_55 = arith.constant 0.000000e+00 : f32
    %137 = vector.broadcast %cst_55 : f32 to vector<1x256xf32>
    %138 = arith.select %136, %111, %137 : vector<1x256xi1>, vector<1x256xf32>
    %139 = arith.addf %134, %138 : vector<1x256xf32>
    %c2_i32 = arith.constant 2 : i32
    %140 = vector.broadcast %c2_i32 : i32 to vector<1x256xi32>
    %141 = arith.cmpi eq, %112, %140 : vector<1x256xi32>
    %cst_56 = arith.constant 0.000000e+00 : f32
    %142 = vector.broadcast %cst_56 : f32 to vector<1x256xf32>
    %143 = arith.select %141, %104, %142 : vector<1x256xi1>, vector<1x256xf32>
    %c1_i32_57 = arith.constant 1 : i32
    %144 = vector.broadcast %c1_i32_57 : i32 to vector<1x256xi32>
    %145 = arith.cmpi eq, %112, %144 : vector<1x256xi32>
    %cst_58 = arith.constant 0.000000e+00 : f32
    %146 = vector.broadcast %cst_58 : f32 to vector<1x256xf32>
    %147 = arith.select %145, %111, %146 : vector<1x256xi1>, vector<1x256xf32>
    %148 = arith.addf %143, %147 : vector<1x256xf32>
    %c3_i32 = arith.constant 3 : i32
    %149 = vector.broadcast %c3_i32 : i32 to vector<1x256xi32>
    %150 = arith.cmpi eq, %112, %149 : vector<1x256xi32>
    %cst_59 = arith.constant 0.000000e+00 : f32
    %151 = vector.broadcast %cst_59 : f32 to vector<1x256xf32>
    %152 = arith.select %150, %104, %151 : vector<1x256xi1>, vector<1x256xf32>
    %c2_i32_60 = arith.constant 2 : i32
    %153 = vector.broadcast %c2_i32_60 : i32 to vector<1x256xi32>
    %154 = arith.cmpi eq, %112, %153 : vector<1x256xi32>
    %cst_61 = arith.constant 0.000000e+00 : f32
    %155 = vector.broadcast %cst_61 : f32 to vector<1x256xf32>
    %156 = arith.select %154, %111, %155 : vector<1x256xi1>, vector<1x256xf32>
    %157 = arith.addf %152, %156 : vector<1x256xf32>
    %c4_i32 = arith.constant 4 : i32
    %158 = vector.broadcast %c4_i32 : i32 to vector<1x256xi32>
    %159 = arith.cmpi eq, %112, %158 : vector<1x256xi32>
    %cst_62 = arith.constant 0.000000e+00 : f32
    %160 = vector.broadcast %cst_62 : f32 to vector<1x256xf32>
    %161 = arith.select %159, %104, %160 : vector<1x256xi1>, vector<1x256xf32>
    %c3_i32_63 = arith.constant 3 : i32
    %162 = vector.broadcast %c3_i32_63 : i32 to vector<1x256xi32>
    %163 = arith.cmpi eq, %112, %162 : vector<1x256xi32>
    %cst_64 = arith.constant 0.000000e+00 : f32
    %164 = vector.broadcast %cst_64 : f32 to vector<1x256xf32>
    %165 = arith.select %163, %111, %164 : vector<1x256xi1>, vector<1x256xf32>
    %166 = arith.addf %161, %165 : vector<1x256xf32>
    %c5_i32 = arith.constant 5 : i32
    %167 = vector.broadcast %c5_i32 : i32 to vector<1x256xi32>
    %168 = arith.cmpi eq, %112, %167 : vector<1x256xi32>
    %cst_65 = arith.constant 0.000000e+00 : f32
    %169 = vector.broadcast %cst_65 : f32 to vector<1x256xf32>
    %170 = arith.select %168, %104, %169 : vector<1x256xi1>, vector<1x256xf32>
    %c4_i32_66 = arith.constant 4 : i32
    %171 = vector.broadcast %c4_i32_66 : i32 to vector<1x256xi32>
    %172 = arith.cmpi eq, %112, %171 : vector<1x256xi32>
    %cst_67 = arith.constant 0.000000e+00 : f32
    %173 = vector.broadcast %cst_67 : f32 to vector<1x256xf32>
    %174 = arith.select %172, %111, %173 : vector<1x256xi1>, vector<1x256xf32>
    %175 = arith.addf %170, %174 : vector<1x256xf32>
    %c0_68 = arith.constant 0 : index
    %c0_69 = arith.constant 0 : index
    %c0_70 = arith.constant 0 : index
    %176 = vector.load %arg6[%c0_68, %c0_69, %c0_70] : memref<1x3x256xf32, #tpu.memory_space<vmem>>, vector<1x3x256xf32>
    %177 = vector.shape_cast %176 : vector<1x3x256xf32> to vector<3x256xf32>
    %178 = vector.broadcast %1 : vector<1x256xf32> to vector<3x256xf32>
    %179 = arith.mulf %178, %177 : vector<3x256xf32>
    %c16_i32 = arith.constant 16 : i32
    %180 = tpu.dynamic_rotate %177 by %c16_i32 dim 1 : vector<3x256xf32>, i32 -> vector<3x256xf32>
    %181 = vector.broadcast %2 : vector<1x256xf32> to vector<3x256xf32>
    %182 = arith.mulf %181, %180 : vector<3x256xf32>
    %183 = arith.addf %179, %182 : vector<3x256xf32>
    %c240_i32 = arith.constant 240 : i32
    %184 = tpu.dynamic_rotate %177 by %c240_i32 dim 1 : vector<3x256xf32>, i32 -> vector<3x256xf32>
    %185 = vector.broadcast %3 : vector<1x256xf32> to vector<3x256xf32>
    %186 = arith.mulf %185, %184 : vector<3x256xf32>
    %187 = arith.addf %183, %186 : vector<3x256xf32>
    %cst_71 = arith.constant 0.000000e+00 : f32
    %188 = vector.broadcast %cst_71 : f32 to vector<3x256xf32>
    %c1_i32_72 = arith.constant 1 : i32
    %189 = tpu.dynamic_rotate %187 by %c1_i32_72 dim 1 : vector<3x256xf32>, i32 -> vector<3x256xf32>
    %190 = vector.broadcast %121 : vector<1x256xf32> to vector<3x256xf32>
    %191 = arith.mulf %190, %189 : vector<3x256xf32>
    %192 = arith.addf %188, %191 : vector<3x256xf32>
    %193 = vector.broadcast %130 : vector<1x256xf32> to vector<3x256xf32>
    %194 = arith.mulf %193, %187 : vector<3x256xf32>
    %195 = arith.addf %192, %194 : vector<3x256xf32>
    %c255_i32 = arith.constant 255 : i32
    %196 = tpu.dynamic_rotate %187 by %c255_i32 dim 1 : vector<3x256xf32>, i32 -> vector<3x256xf32>
    %197 = vector.broadcast %139 : vector<1x256xf32> to vector<3x256xf32>
    %198 = arith.mulf %197, %196 : vector<3x256xf32>
    %199 = arith.addf %195, %198 : vector<3x256xf32>
    %c254_i32 = arith.constant 254 : i32
    %200 = tpu.dynamic_rotate %187 by %c254_i32 dim 1 : vector<3x256xf32>, i32 -> vector<3x256xf32>
    %201 = vector.broadcast %148 : vector<1x256xf32> to vector<3x256xf32>
    %202 = arith.mulf %201, %200 : vector<3x256xf32>
    %203 = arith.addf %199, %202 : vector<3x256xf32>
    %c253_i32 = arith.constant 253 : i32
    %204 = tpu.dynamic_rotate %187 by %c253_i32 dim 1 : vector<3x256xf32>, i32 -> vector<3x256xf32>
    %205 = vector.broadcast %157 : vector<1x256xf32> to vector<3x256xf32>
    %206 = arith.mulf %205, %204 : vector<3x256xf32>
    %207 = arith.addf %203, %206 : vector<3x256xf32>
    %c252_i32 = arith.constant 252 : i32
    %208 = tpu.dynamic_rotate %187 by %c252_i32 dim 1 : vector<3x256xf32>, i32 -> vector<3x256xf32>
    %209 = vector.broadcast %166 : vector<1x256xf32> to vector<3x256xf32>
    %210 = arith.mulf %209, %208 : vector<3x256xf32>
    %211 = arith.addf %207, %210 : vector<3x256xf32>
    %c251_i32 = arith.constant 251 : i32
    %212 = tpu.dynamic_rotate %187 by %c251_i32 dim 1 : vector<3x256xf32>, i32 -> vector<3x256xf32>
    %213 = vector.broadcast %175 : vector<1x256xf32> to vector<3x256xf32>
    %214 = arith.mulf %213, %212 : vector<3x256xf32>
    %215 = arith.addf %211, %214 : vector<3x256xf32>
    %c0_73 = arith.constant 0 : index
    %c0_74 = arith.constant 0 : index
    %c0_75 = arith.constant 0 : index
    %216 = vector.load %arg4[%c0_73, %c0_74, %c0_75] : memref<1x3x256xf32, #tpu.memory_space<vmem>>, vector<1x3x256xf32>
    %217 = vector.shape_cast %216 : vector<1x3x256xf32> to vector<3x256xf32>
    %218 = vector.broadcast %1 : vector<1x256xf32> to vector<3x256xf32>
    %219 = arith.mulf %218, %217 : vector<3x256xf32>
    %c16_i32_76 = arith.constant 16 : i32
    %220 = tpu.dynamic_rotate %217 by %c16_i32_76 dim 1 : vector<3x256xf32>, i32 -> vector<3x256xf32>
    %221 = vector.broadcast %2 : vector<1x256xf32> to vector<3x256xf32>
    %222 = arith.mulf %221, %220 : vector<3x256xf32>
    %223 = arith.addf %219, %222 : vector<3x256xf32>
    %c240_i32_77 = arith.constant 240 : i32
    %224 = tpu.dynamic_rotate %217 by %c240_i32_77 dim 1 : vector<3x256xf32>, i32 -> vector<3x256xf32>
    %225 = vector.broadcast %3 : vector<1x256xf32> to vector<3x256xf32>
    %226 = arith.mulf %225, %224 : vector<3x256xf32>
    %227 = arith.addf %223, %226 : vector<3x256xf32>
    %cst_78 = arith.constant 0.000000e+00 : f32
    %228 = vector.broadcast %cst_78 : f32 to vector<3x256xf32>
    %c1_i32_79 = arith.constant 1 : i32
    %229 = tpu.dynamic_rotate %227 by %c1_i32_79 dim 1 : vector<3x256xf32>, i32 -> vector<3x256xf32>
    %230 = vector.broadcast %121 : vector<1x256xf32> to vector<3x256xf32>
    %231 = arith.mulf %230, %229 : vector<3x256xf32>
    %232 = arith.addf %228, %231 : vector<3x256xf32>
    %233 = vector.broadcast %130 : vector<1x256xf32> to vector<3x256xf32>
    %234 = arith.mulf %233, %227 : vector<3x256xf32>
    %235 = arith.addf %232, %234 : vector<3x256xf32>
    %c255_i32_80 = arith.constant 255 : i32
    %236 = tpu.dynamic_rotate %227 by %c255_i32_80 dim 1 : vector<3x256xf32>, i32 -> vector<3x256xf32>
    %237 = vector.broadcast %139 : vector<1x256xf32> to vector<3x256xf32>
    %238 = arith.mulf %237, %236 : vector<3x256xf32>
    %239 = arith.addf %235, %238 : vector<3x256xf32>
    %c254_i32_81 = arith.constant 254 : i32
    %240 = tpu.dynamic_rotate %227 by %c254_i32_81 dim 1 : vector<3x256xf32>, i32 -> vector<3x256xf32>
    %241 = vector.broadcast %148 : vector<1x256xf32> to vector<3x256xf32>
    %242 = arith.mulf %241, %240 : vector<3x256xf32>
    %243 = arith.addf %239, %242 : vector<3x256xf32>
    %c253_i32_82 = arith.constant 253 : i32
    %244 = tpu.dynamic_rotate %227 by %c253_i32_82 dim 1 : vector<3x256xf32>, i32 -> vector<3x256xf32>
    %245 = vector.broadcast %157 : vector<1x256xf32> to vector<3x256xf32>
    %246 = arith.mulf %245, %244 : vector<3x256xf32>
    %247 = arith.addf %243, %246 : vector<3x256xf32>
    %c252_i32_83 = arith.constant 252 : i32
    %248 = tpu.dynamic_rotate %227 by %c252_i32_83 dim 1 : vector<3x256xf32>, i32 -> vector<3x256xf32>
    %249 = vector.broadcast %166 : vector<1x256xf32> to vector<3x256xf32>
    %250 = arith.mulf %249, %248 : vector<3x256xf32>
    %251 = arith.addf %247, %250 : vector<3x256xf32>
    %c251_i32_84 = arith.constant 251 : i32
    %252 = tpu.dynamic_rotate %227 by %c251_i32_84 dim 1 : vector<3x256xf32>, i32 -> vector<3x256xf32>
    %253 = vector.broadcast %175 : vector<1x256xf32> to vector<3x256xf32>
    %254 = arith.mulf %253, %252 : vector<3x256xf32>
    %255 = arith.addf %251, %254 : vector<3x256xf32>
    %c0_85 = arith.constant 0 : index
    %c0_86 = arith.constant 0 : index
    %c0_87 = arith.constant 0 : index
    %256 = vector.load %arg11[%c0_85, %c0_86, %c0_87] : memref<1x3x256xf32, #tpu.memory_space<vmem>>, vector<1x3x256xf32>
    %257 = vector.shape_cast %256 : vector<1x3x256xf32> to vector<3x256xf32>
    %258 = vector.shape_cast %215 : vector<3x256xf32> to vector<1x3x256xf32>
    tpu.vector_store %arg11[%c0_85, %c0_86, %c0_87], %258 {strides = array<i32>} : memref<1x3x256xf32, #tpu.memory_space<vmem>>, vector<1x3x256xf32>,
    %c0_88 = arith.constant 0 : index
    %c0_89 = arith.constant 0 : index
    %c0_90 = arith.constant 0 : index
    %259 = vector.load %arg7[%c0_88, %c0_89, %c0_90] : memref<1x3x256xf32, #tpu.memory_space<vmem>>, vector<1x3x256xf32>
    %260 = vector.shape_cast %259 : vector<1x3x256xf32> to vector<3x256xf32>
    %c0_91 = arith.constant 0 : index
    %c0_92 = arith.constant 0 : index
    %c0_93 = arith.constant 0 : index
    %261 = vector.load %arg5[%c0_91, %c0_92, %c0_93] : memref<1x3x256xf32, #tpu.memory_space<vmem>>, vector<1x3x256xf32>
    %262 = vector.shape_cast %261 : vector<1x3x256xf32> to vector<3x256xf32>
    %263 = vector.extract_strided_slice %215 {offsets = [0, 0], sizes = [1, 256], strides = [1, 1]} : vector<3x256xf32> to vector<1x256xf32>
    %264 = vector.extract_strided_slice %215 {offsets = [1, 0], sizes = [1, 256], strides = [1, 1]} : vector<3x256xf32> to vector<1x256xf32>
    %265 = vector.extract_strided_slice %215 {offsets = [2, 0], sizes = [1, 256], strides = [1, 1]} : vector<3x256xf32> to vector<1x256xf32>
    %266 = vector.extract_strided_slice %255 {offsets = [0, 0], sizes = [1, 256], strides = [1, 1]} : vector<3x256xf32> to vector<1x256xf32>
    %267 = vector.extract_strided_slice %255 {offsets = [1, 0], sizes = [1, 256], strides = [1, 1]} : vector<3x256xf32> to vector<1x256xf32>
    %268 = vector.extract_strided_slice %255 {offsets = [2, 0], sizes = [1, 256], strides = [1, 1]} : vector<3x256xf32> to vector<1x256xf32>
    %269 = vector.extract_strided_slice %260 {offsets = [0, 0], sizes = [1, 256], strides = [1, 1]} : vector<3x256xf32> to vector<1x256xf32>
    %270 = vector.extract_strided_slice %260 {offsets = [1, 0], sizes = [1, 256], strides = [1, 1]} : vector<3x256xf32> to vector<1x256xf32>
    %271 = vector.extract_strided_slice %260 {offsets = [2, 0], sizes = [1, 256], strides = [1, 1]} : vector<3x256xf32> to vector<1x256xf32>
    %272 = vector.extract_strided_slice %262 {offsets = [0, 0], sizes = [1, 256], strides = [1, 1]} : vector<3x256xf32> to vector<1x256xf32>
    %273 = vector.extract_strided_slice %262 {offsets = [1, 0], sizes = [1, 256], strides = [1, 1]} : vector<3x256xf32> to vector<1x256xf32>
    %274 = vector.extract_strided_slice %262 {offsets = [2, 0], sizes = [1, 256], strides = [1, 1]} : vector<3x256xf32> to vector<1x256xf32>
    %cst_94 = arith.constant 0.000000e+00 : f32
    %275 = vector.broadcast %cst_94 : f32 to vector<1x256xf32>
    %cst_95 = arith.constant 0.228311315 : f32
    %276 = vector.broadcast %cst_95 : f32 to vector<1x256xf32>
    %277 = arith.mulf %276, %263 : vector<1x256xf32>
    %278 = arith.addf %275, %277 : vector<1x256xf32>
    %cst_96 = arith.constant -0.484169364 : f32
    %279 = vector.broadcast %cst_96 : f32 to vector<1x256xf32>
    %280 = arith.mulf %279, %269 : vector<1x256xf32>
    %281 = arith.addf %278, %280 : vector<1x256xf32>
    %cst_97 = arith.constant 0.0365025066 : f32
    %282 = vector.broadcast %cst_97 : f32 to vector<1x256xf32>
    %283 = arith.mulf %282, %264 : vector<1x256xf32>
    %284 = arith.addf %281, %283 : vector<1x256xf32>
    %cst_98 = arith.constant -0.0638220832 : f32
    %285 = vector.broadcast %cst_98 : f32 to vector<1x256xf32>
    %286 = arith.mulf %285, %270 : vector<1x256xf32>
    %287 = arith.addf %284, %286 : vector<1x256xf32>
    %cst_99 = arith.constant 0.133158967 : f32
    %288 = vector.broadcast %cst_99 : f32 to vector<1x256xf32>
    %289 = arith.mulf %288, %265 : vector<1x256xf32>
    %290 = arith.addf %287, %289 : vector<1x256xf32>
    %cst_100 = arith.constant -0.268639982 : f32
    %291 = vector.broadcast %cst_100 : f32 to vector<1x256xf32>
    %292 = arith.mulf %291, %271 : vector<1x256xf32>
    %293 = arith.addf %290, %292 : vector<1x256xf32>
    %cst_101 = arith.constant 0.100102298 : f32
    %294 = vector.broadcast %cst_101 : f32 to vector<1x256xf32>
    %295 = arith.mulf %294, %266 : vector<1x256xf32>
    %296 = arith.addf %293, %295 : vector<1x256xf32>
    %cst_102 = arith.constant 0.116070747 : f32
    %297 = vector.broadcast %cst_102 : f32 to vector<1x256xf32>
    %298 = arith.mulf %297, %272 : vector<1x256xf32>
    %299 = arith.addf %296, %298 : vector<1x256xf32>
    %cst_103 = arith.constant 0.44822371 : f32
    %300 = vector.broadcast %cst_103 : f32 to vector<1x256xf32>
    %301 = arith.mulf %300, %267 : vector<1x256xf32>
    %302 = arith.addf %299, %301 : vector<1x256xf32>
    %cst_104 = arith.constant -0.153241545 : f32
    %303 = vector.broadcast %cst_104 : f32 to vector<1x256xf32>
    %304 = arith.mulf %303, %273 : vector<1x256xf32>
    %305 = arith.addf %302, %304 : vector<1x256xf32>
    %cst_105 = arith.constant -0.0615474805 : f32
    %306 = vector.broadcast %cst_105 : f32 to vector<1x256xf32>
    %307 = arith.mulf %306, %268 : vector<1x256xf32>
    %308 = arith.addf %305, %307 : vector<1x256xf32>
    %cst_106 = arith.constant -0.354189664 : f32
    %309 = vector.broadcast %cst_106 : f32 to vector<1x256xf32>
    %310 = arith.mulf %309, %274 : vector<1x256xf32>
    %311 = arith.addf %308, %310 : vector<1x256xf32>
    %cst_107 = arith.constant 0.000000e+00 : f32
    %312 = vector.broadcast %cst_107 : f32 to vector<1x256xf32>
    %313 = arith.subf %312, %311 : vector<1x256xf32>
    %314 = math.exp %313 : vector<1x256xf32>
    %cst_108 = arith.constant 1.000000e+00 : f32
    %315 = vector.broadcast %cst_108 : f32 to vector<1x256xf32>
    %316 = arith.addf %315, %314 : vector<1x256xf32>
    %cst_109 = arith.constant 1.000000e+00 : f32
    %317 = vector.broadcast %cst_109 : f32 to vector<1x256xf32>
    %318 = arith.divf %317, %316 : vector<1x256xf32>
    %c0_110 = arith.constant 0 : index
    %c0_111 = arith.constant 0 : index
    %c0_112 = arith.constant 0 : index
    %319 = vector.load %arg13[%c0_110, %c0_111, %c0_112] : memref<1x6x256xf32, #tpu.memory_space<vmem>>, vector<1x1x256xf32>
    %320 = vector.shape_cast %319 : vector<1x1x256xf32> to vector<1x256xf32>
    %321 = vector.shape_cast %318 : vector<1x256xf32> to vector<1x1x256xf32>
    tpu.vector_store %arg13[%c0_110, %c0_111, %c0_112], %321 {strides = array<i32>} : memref<1x6x256xf32, #tpu.memory_space<vmem>>, vector<1x1x256xf32>,
    %cst_113 = arith.constant 0.000000e+00 : f32
    %322 = vector.broadcast %cst_113 : f32 to vector<1x256xf32>
    %cst_114 = arith.constant 0.0939203128 : f32
    %323 = vector.broadcast %cst_114 : f32 to vector<1x256xf32>
    %324 = arith.mulf %323, %263 : vector<1x256xf32>
    %325 = arith.addf %322, %324 : vector<1x256xf32>
    %cst_115 = arith.constant -0.00845466834 : f32
    %326 = vector.broadcast %cst_115 : f32 to vector<1x256xf32>
    %327 = arith.mulf %326, %269 : vector<1x256xf32>
    %328 = arith.addf %325, %327 : vector<1x256xf32>
    %cst_116 = arith.constant -0.256228715 : f32
    %329 = vector.broadcast %cst_116 : f32 to vector<1x256xf32>
    %330 = arith.mulf %329, %264 : vector<1x256xf32>
    %331 = arith.addf %328, %330 : vector<1x256xf32>
    %cst_117 = arith.constant 0.128499568 : f32
    %332 = vector.broadcast %cst_117 : f32 to vector<1x256xf32>
    %333 = arith.mulf %332, %270 : vector<1x256xf32>
    %334 = arith.addf %331, %333 : vector<1x256xf32>
    %cst_118 = arith.constant -0.765896916 : f32
    %335 = vector.broadcast %cst_118 : f32 to vector<1x256xf32>
    %336 = arith.mulf %335, %265 : vector<1x256xf32>
    %337 = arith.addf %334, %336 : vector<1x256xf32>
    %cst_119 = arith.constant 0.0199551675 : f32
    %338 = vector.broadcast %cst_119 : f32 to vector<1x256xf32>
    %339 = arith.mulf %338, %271 : vector<1x256xf32>
    %340 = arith.addf %337, %339 : vector<1x256xf32>
    %cst_120 = arith.constant 0.196085572 : f32
    %341 = vector.broadcast %cst_120 : f32 to vector<1x256xf32>
    %342 = arith.mulf %341, %266 : vector<1x256xf32>
    %343 = arith.addf %340, %342 : vector<1x256xf32>
    %cst_121 = arith.constant 0.0907415673 : f32
    %344 = vector.broadcast %cst_121 : f32 to vector<1x256xf32>
    %345 = arith.mulf %344, %272 : vector<1x256xf32>
    %346 = arith.addf %343, %345 : vector<1x256xf32>
    %cst_122 = arith.constant 0.259330869 : f32
    %347 = vector.broadcast %cst_122 : f32 to vector<1x256xf32>
    %348 = arith.mulf %347, %267 : vector<1x256xf32>
    %349 = arith.addf %346, %348 : vector<1x256xf32>
    %cst_123 = arith.constant -0.190296635 : f32
    %350 = vector.broadcast %cst_123 : f32 to vector<1x256xf32>
    %351 = arith.mulf %350, %273 : vector<1x256xf32>
    %352 = arith.addf %349, %351 : vector<1x256xf32>
    %cst_124 = arith.constant -0.2226495 : f32
    %353 = vector.broadcast %cst_124 : f32 to vector<1x256xf32>
    %354 = arith.mulf %353, %268 : vector<1x256xf32>
    %355 = arith.addf %352, %354 : vector<1x256xf32>
    %cst_125 = arith.constant -0.108822353 : f32
    %356 = vector.broadcast %cst_125 : f32 to vector<1x256xf32>
    %357 = arith.mulf %356, %274 : vector<1x256xf32>
    %358 = arith.addf %355, %357 : vector<1x256xf32>
    %cst_126 = arith.constant 0.000000e+00 : f32
    %359 = vector.broadcast %cst_126 : f32 to vector<1x256xf32>
    %360 = arith.subf %359, %358 : vector<1x256xf32>
    %361 = math.exp %360 : vector<1x256xf32>
    %cst_127 = arith.constant 1.000000e+00 : f32
    %362 = vector.broadcast %cst_127 : f32 to vector<1x256xf32>
    %363 = arith.addf %362, %361 : vector<1x256xf32>
    %cst_128 = arith.constant 1.000000e+00 : f32
    %364 = vector.broadcast %cst_128 : f32 to vector<1x256xf32>
    %365 = arith.divf %364, %363 : vector<1x256xf32>
    %c0_129 = arith.constant 0 : index
    %c1 = arith.constant 1 : index
    %c0_130 = arith.constant 0 : index
    %366 = vector.load %arg13[%c0_129, %c1, %c0_130] : memref<1x6x256xf32, #tpu.memory_space<vmem>>, vector<1x1x256xf32>
    %367 = vector.shape_cast %366 : vector<1x1x256xf32> to vector<1x256xf32>
    %368 = vector.shape_cast %365 : vector<1x256xf32> to vector<1x1x256xf32>
    tpu.vector_store %arg13[%c0_129, %c1, %c0_130], %368 {strides = array<i32>} : memref<1x6x256xf32, #tpu.memory_space<vmem>>, vector<1x1x256xf32>,
    %cst_131 = arith.constant 0.000000e+00 : f32
    %369 = vector.broadcast %cst_131 : f32 to vector<1x256xf32>
    %cst_132 = arith.constant 0.680926382 : f32
    %370 = vector.broadcast %cst_132 : f32 to vector<1x256xf32>
    %371 = arith.mulf %370, %263 : vector<1x256xf32>
    %372 = arith.addf %369, %371 : vector<1x256xf32>
    %cst_133 = arith.constant -0.201738134 : f32
    %373 = vector.broadcast %cst_133 : f32 to vector<1x256xf32>
    %374 = arith.mulf %373, %269 : vector<1x256xf32>
    %375 = arith.addf %372, %374 : vector<1x256xf32>
    %cst_134 = arith.constant -0.436309695 : f32
    %376 = vector.broadcast %cst_134 : f32 to vector<1x256xf32>
    %377 = arith.mulf %376, %264 : vector<1x256xf32>
    %378 = arith.addf %375, %377 : vector<1x256xf32>
    %cst_135 = arith.constant -0.107865952 : f32
    %379 = vector.broadcast %cst_135 : f32 to vector<1x256xf32>
    %380 = arith.mulf %379, %270 : vector<1x256xf32>
    %381 = arith.addf %378, %380 : vector<1x256xf32>
    %cst_136 = arith.constant 0.0137275551 : f32
    %382 = vector.broadcast %cst_136 : f32 to vector<1x256xf32>
    %383 = arith.mulf %382, %265 : vector<1x256xf32>
    %384 = arith.addf %381, %383 : vector<1x256xf32>
    %cst_137 = arith.constant -0.243943885 : f32
    %385 = vector.broadcast %cst_137 : f32 to vector<1x256xf32>
    %386 = arith.mulf %385, %271 : vector<1x256xf32>
    %387 = arith.addf %384, %386 : vector<1x256xf32>
    %cst_138 = arith.constant -0.0561551563 : f32
    %388 = vector.broadcast %cst_138 : f32 to vector<1x256xf32>
    %389 = arith.mulf %388, %266 : vector<1x256xf32>
    %390 = arith.addf %387, %389 : vector<1x256xf32>
    %cst_139 = arith.constant -0.517884791 : f32
    %391 = vector.broadcast %cst_139 : f32 to vector<1x256xf32>
    %392 = arith.mulf %391, %272 : vector<1x256xf32>
    %393 = arith.addf %390, %392 : vector<1x256xf32>
    %cst_140 = arith.constant 0.459833771 : f32
    %394 = vector.broadcast %cst_140 : f32 to vector<1x256xf32>
    %395 = arith.mulf %394, %267 : vector<1x256xf32>
    %396 = arith.addf %393, %395 : vector<1x256xf32>
    %cst_141 = arith.constant 0.0532278419 : f32
    %397 = vector.broadcast %cst_141 : f32 to vector<1x256xf32>
    %398 = arith.mulf %397, %273 : vector<1x256xf32>
    %399 = arith.addf %396, %398 : vector<1x256xf32>
    %cst_142 = arith.constant 0.440807641 : f32
    %400 = vector.broadcast %cst_142 : f32 to vector<1x256xf32>
    %401 = arith.mulf %400, %268 : vector<1x256xf32>
    %402 = arith.addf %399, %401 : vector<1x256xf32>
    %cst_143 = arith.constant -0.120534278 : f32
    %403 = vector.broadcast %cst_143 : f32 to vector<1x256xf32>
    %404 = arith.mulf %403, %274 : vector<1x256xf32>
    %405 = arith.addf %402, %404 : vector<1x256xf32>
    %cst_144 = arith.constant 0.000000e+00 : f32
    %406 = vector.broadcast %cst_144 : f32 to vector<1x256xf32>
    %407 = arith.subf %406, %405 : vector<1x256xf32>
    %408 = math.exp %407 : vector<1x256xf32>
    %cst_145 = arith.constant 1.000000e+00 : f32
    %409 = vector.broadcast %cst_145 : f32 to vector<1x256xf32>
    %410 = arith.addf %409, %408 : vector<1x256xf32>
    %cst_146 = arith.constant 1.000000e+00 : f32
    %411 = vector.broadcast %cst_146 : f32 to vector<1x256xf32>
    %412 = arith.divf %411, %410 : vector<1x256xf32>
    %c0_147 = arith.constant 0 : index
    %c2 = arith.constant 2 : index
    %c0_148 = arith.constant 0 : index
    %413 = vector.load %arg13[%c0_147, %c2, %c0_148] : memref<1x6x256xf32, #tpu.memory_space<vmem>>, vector<1x1x256xf32>
    %414 = vector.shape_cast %413 : vector<1x1x256xf32> to vector<1x256xf32>
    %415 = vector.shape_cast %412 : vector<1x256xf32> to vector<1x1x256xf32>
    tpu.vector_store %arg13[%c0_147, %c2, %c0_148], %415 {strides = array<i32>} : memref<1x6x256xf32, #tpu.memory_space<vmem>>, vector<1x1x256xf32>,
    %cst_149 = arith.constant 0.000000e+00 : f32
    %416 = vector.broadcast %cst_149 : f32 to vector<1x256xf32>
    %cst_150 = arith.constant 0.0464842282 : f32
    %417 = vector.broadcast %cst_150 : f32 to vector<1x256xf32>
    %418 = arith.mulf %417, %263 : vector<1x256xf32>
    %419 = arith.addf %416, %418 : vector<1x256xf32>
    %cst_151 = arith.constant -0.489059508 : f32
    %420 = vector.broadcast %cst_151 : f32 to vector<1x256xf32>
    %421 = arith.mulf %420, %269 : vector<1x256xf32>
    %422 = arith.addf %419, %421 : vector<1x256xf32>
    %cst_152 = arith.constant 0.113448754 : f32
    %423 = vector.broadcast %cst_152 : f32 to vector<1x256xf32>
    %424 = arith.mulf %423, %264 : vector<1x256xf32>
    %425 = arith.addf %422, %424 : vector<1x256xf32>
    %cst_153 = arith.constant 0.13883467 : f32
    %426 = vector.broadcast %cst_153 : f32 to vector<1x256xf32>
    %427 = arith.mulf %426, %270 : vector<1x256xf32>
    %428 = arith.addf %425, %427 : vector<1x256xf32>
    %cst_154 = arith.constant -0.266335726 : f32
    %429 = vector.broadcast %cst_154 : f32 to vector<1x256xf32>
    %430 = arith.mulf %429, %265 : vector<1x256xf32>
    %431 = arith.addf %428, %430 : vector<1x256xf32>
    %cst_155 = arith.constant -0.272189498 : f32
    %432 = vector.broadcast %cst_155 : f32 to vector<1x256xf32>
    %433 = arith.mulf %432, %271 : vector<1x256xf32>
    %434 = arith.addf %431, %433 : vector<1x256xf32>
    %cst_156 = arith.constant -0.594238937 : f32
    %435 = vector.broadcast %cst_156 : f32 to vector<1x256xf32>
    %436 = arith.mulf %435, %266 : vector<1x256xf32>
    %437 = arith.addf %434, %436 : vector<1x256xf32>
    %cst_157 = arith.constant 0.0155836185 : f32
    %438 = vector.broadcast %cst_157 : f32 to vector<1x256xf32>
    %439 = arith.mulf %438, %272 : vector<1x256xf32>
    %440 = arith.addf %437, %439 : vector<1x256xf32>
    %cst_158 = arith.constant -0.104373641 : f32
    %441 = vector.broadcast %cst_158 : f32 to vector<1x256xf32>
    %442 = arith.mulf %441, %267 : vector<1x256xf32>
    %443 = arith.addf %440, %442 : vector<1x256xf32>
    %cst_159 = arith.constant 0.218727171 : f32
    %444 = vector.broadcast %cst_159 : f32 to vector<1x256xf32>
    %445 = arith.mulf %444, %273 : vector<1x256xf32>
    %446 = arith.addf %443, %445 : vector<1x256xf32>
    %cst_160 = arith.constant 0.0469046906 : f32
    %447 = vector.broadcast %cst_160 : f32 to vector<1x256xf32>
    %448 = arith.mulf %447, %268 : vector<1x256xf32>
    %449 = arith.addf %446, %448 : vector<1x256xf32>
    %cst_161 = arith.constant 0.0386948735 : f32
    %450 = vector.broadcast %cst_161 : f32 to vector<1x256xf32>
    %451 = arith.mulf %450, %274 : vector<1x256xf32>
    %452 = arith.addf %449, %451 : vector<1x256xf32>
    %cst_162 = arith.constant 0.000000e+00 : f32
    %453 = vector.broadcast %cst_162 : f32 to vector<1x256xf32>
    %454 = arith.subf %453, %452 : vector<1x256xf32>
    %455 = math.exp %454 : vector<1x256xf32>
    %cst_163 = arith.constant 1.000000e+00 : f32
    %456 = vector.broadcast %cst_163 : f32 to vector<1x256xf32>
    %457 = arith.addf %456, %455 : vector<1x256xf32>
    %cst_164 = arith.constant 1.000000e+00 : f32
    %458 = vector.broadcast %cst_164 : f32 to vector<1x256xf32>
    %459 = arith.divf %458, %457 : vector<1x256xf32>
    %c0_165 = arith.constant 0 : index
    %c3 = arith.constant 3 : index
    %c0_166 = arith.constant 0 : index
    %460 = vector.load %arg13[%c0_165, %c3, %c0_166] : memref<1x6x256xf32, #tpu.memory_space<vmem>>, vector<1x1x256xf32>
    %461 = vector.shape_cast %460 : vector<1x1x256xf32> to vector<1x256xf32>
    %462 = vector.shape_cast %459 : vector<1x256xf32> to vector<1x1x256xf32>
    tpu.vector_store %arg13[%c0_165, %c3, %c0_166], %462 {strides = array<i32>} : memref<1x6x256xf32, #tpu.memory_space<vmem>>, vector<1x1x256xf32>,
    %cst_167 = arith.constant 0.000000e+00 : f32
    %463 = vector.broadcast %cst_167 : f32 to vector<1x256xf32>
    %cst_168 = arith.constant 0.369087189 : f32
    %464 = vector.broadcast %cst_168 : f32 to vector<1x256xf32>
    %465 = arith.mulf %464, %263 : vector<1x256xf32>
    %466 = arith.addf %463, %465 : vector<1x256xf32>
    %cst_169 = arith.constant 0.34182021 : f32
    %467 = vector.broadcast %cst_169 : f32 to vector<1x256xf32>
    %468 = arith.mulf %467, %269 : vector<1x256xf32>
    %469 = arith.addf %466, %468 : vector<1x256xf32>
    %cst_170 = arith.constant 0.360713959 : f32
    %470 = vector.broadcast %cst_170 : f32 to vector<1x256xf32>
    %471 = arith.mulf %470, %264 : vector<1x256xf32>
    %472 = arith.addf %469, %471 : vector<1x256xf32>
    %cst_171 = arith.constant -0.370447755 : f32
    %473 = vector.broadcast %cst_171 : f32 to vector<1x256xf32>
    %474 = arith.mulf %473, %270 : vector<1x256xf32>
    %475 = arith.addf %472, %474 : vector<1x256xf32>
    %cst_172 = arith.constant -0.116198048 : f32
    %476 = vector.broadcast %cst_172 : f32 to vector<1x256xf32>
    %477 = arith.mulf %476, %265 : vector<1x256xf32>
    %478 = arith.addf %475, %477 : vector<1x256xf32>
    %cst_173 = arith.constant 0.12070249 : f32
    %479 = vector.broadcast %cst_173 : f32 to vector<1x256xf32>
    %480 = arith.mulf %479, %271 : vector<1x256xf32>
    %481 = arith.addf %478, %480 : vector<1x256xf32>
    %cst_174 = arith.constant -0.0906908288 : f32
    %482 = vector.broadcast %cst_174 : f32 to vector<1x256xf32>
    %483 = arith.mulf %482, %266 : vector<1x256xf32>
    %484 = arith.addf %481, %483 : vector<1x256xf32>
    %cst_175 = arith.constant -0.205443025 : f32
    %485 = vector.broadcast %cst_175 : f32 to vector<1x256xf32>
    %486 = arith.mulf %485, %272 : vector<1x256xf32>
    %487 = arith.addf %484, %486 : vector<1x256xf32>
    %cst_176 = arith.constant -0.314565897 : f32
    %488 = vector.broadcast %cst_176 : f32 to vector<1x256xf32>
    %489 = arith.mulf %488, %267 : vector<1x256xf32>
    %490 = arith.addf %487, %489 : vector<1x256xf32>
    %cst_177 = arith.constant -0.261239141 : f32
    %491 = vector.broadcast %cst_177 : f32 to vector<1x256xf32>
    %492 = arith.mulf %491, %273 : vector<1x256xf32>
    %493 = arith.addf %490, %492 : vector<1x256xf32>
    %cst_178 = arith.constant -0.426005393 : f32
    %494 = vector.broadcast %cst_178 : f32 to vector<1x256xf32>
    %495 = arith.mulf %494, %268 : vector<1x256xf32>
    %496 = arith.addf %493, %495 : vector<1x256xf32>
    %cst_179 = arith.constant -0.173654899 : f32
    %497 = vector.broadcast %cst_179 : f32 to vector<1x256xf32>
    %498 = arith.mulf %497, %274 : vector<1x256xf32>
    %499 = arith.addf %496, %498 : vector<1x256xf32>
    %cst_180 = arith.constant 0.000000e+00 : f32
    %500 = vector.broadcast %cst_180 : f32 to vector<1x256xf32>
    %501 = arith.subf %500, %499 : vector<1x256xf32>
    %502 = math.exp %501 : vector<1x256xf32>
    %cst_181 = arith.constant 1.000000e+00 : f32
    %503 = vector.broadcast %cst_181 : f32 to vector<1x256xf32>
    %504 = arith.addf %503, %502 : vector<1x256xf32>
    %cst_182 = arith.constant 1.000000e+00 : f32
    %505 = vector.broadcast %cst_182 : f32 to vector<1x256xf32>
    %506 = arith.divf %505, %504 : vector<1x256xf32>
    %c0_183 = arith.constant 0 : index
    %c4 = arith.constant 4 : index
    %c0_184 = arith.constant 0 : index
    %507 = vector.load %arg13[%c0_183, %c4, %c0_184] : memref<1x6x256xf32, #tpu.memory_space<vmem>>, vector<1x1x256xf32>
    %508 = vector.shape_cast %507 : vector<1x1x256xf32> to vector<1x256xf32>
    %509 = vector.shape_cast %506 : vector<1x256xf32> to vector<1x1x256xf32>
    tpu.vector_store %arg13[%c0_183, %c4, %c0_184], %509 {strides = array<i32>} : memref<1x6x256xf32, #tpu.memory_space<vmem>>, vector<1x1x256xf32>,
    %cst_185 = arith.constant 0.000000e+00 : f32
    %510 = vector.broadcast %cst_185 : f32 to vector<1x256xf32>
    %cst_186 = arith.constant -0.511881053 : f32
    %511 = vector.broadcast %cst_186 : f32 to vector<1x256xf32>
    %512 = arith.mulf %511, %263 : vector<1x256xf32>
    %513 = arith.addf %510, %512 : vector<1x256xf32>
    %cst_187 = arith.constant -0.0934657604 : f32
    %514 = vector.broadcast %cst_187 : f32 to vector<1x256xf32>
    %515 = arith.mulf %514, %269 : vector<1x256xf32>
    %516 = arith.addf %513, %515 : vector<1x256xf32>
    %cst_188 = arith.constant 0.585232615 : f32
    %517 = vector.broadcast %cst_188 : f32 to vector<1x256xf32>
    %518 = arith.mulf %517, %264 : vector<1x256xf32>
    %519 = arith.addf %516, %518 : vector<1x256xf32>
    %cst_189 = arith.constant 0.0168496035 : f32
    %520 = vector.broadcast %cst_189 : f32 to vector<1x256xf32>
    %521 = arith.mulf %520, %270 : vector<1x256xf32>
    %522 = arith.addf %519, %521 : vector<1x256xf32>
    %cst_190 = arith.constant -0.152895659 : f32
    %523 = vector.broadcast %cst_190 : f32 to vector<1x256xf32>
    %524 = arith.mulf %523, %265 : vector<1x256xf32>
    %525 = arith.addf %522, %524 : vector<1x256xf32>
    %cst_191 = arith.constant -0.349544942 : f32
    %526 = vector.broadcast %cst_191 : f32 to vector<1x256xf32>
    %527 = arith.mulf %526, %271 : vector<1x256xf32>
    %528 = arith.addf %525, %527 : vector<1x256xf32>
    %cst_192 = arith.constant -0.131422296 : f32
    %529 = vector.broadcast %cst_192 : f32 to vector<1x256xf32>
    %530 = arith.mulf %529, %266 : vector<1x256xf32>
    %531 = arith.addf %528, %530 : vector<1x256xf32>
    %cst_193 = arith.constant 0.270247936 : f32
    %532 = vector.broadcast %cst_193 : f32 to vector<1x256xf32>
    %533 = arith.mulf %532, %272 : vector<1x256xf32>
    %534 = arith.addf %531, %533 : vector<1x256xf32>
    %cst_194 = arith.constant -0.375838608 : f32
    %535 = vector.broadcast %cst_194 : f32 to vector<1x256xf32>
    %536 = arith.mulf %535, %267 : vector<1x256xf32>
    %537 = arith.addf %534, %536 : vector<1x256xf32>
    %cst_195 = arith.constant 0.139698729 : f32
    %538 = vector.broadcast %cst_195 : f32 to vector<1x256xf32>
    %539 = arith.mulf %538, %273 : vector<1x256xf32>
    %540 = arith.addf %537, %539 : vector<1x256xf32>
    %cst_196 = arith.constant 0.233247101 : f32
    %541 = vector.broadcast %cst_196 : f32 to vector<1x256xf32>
    %542 = arith.mulf %541, %268 : vector<1x256xf32>
    %543 = arith.addf %540, %542 : vector<1x256xf32>
    %cst_197 = arith.constant -0.460873097 : f32
    %544 = vector.broadcast %cst_197 : f32 to vector<1x256xf32>
    %545 = arith.mulf %544, %274 : vector<1x256xf32>
    %546 = arith.addf %543, %545 : vector<1x256xf32>
    %cst_198 = arith.constant 0.000000e+00 : f32
    %547 = vector.broadcast %cst_198 : f32 to vector<1x256xf32>
    %548 = arith.subf %547, %546 : vector<1x256xf32>
    %549 = math.exp %548 : vector<1x256xf32>
    %cst_199 = arith.constant 1.000000e+00 : f32
    %550 = vector.broadcast %cst_199 : f32 to vector<1x256xf32>
    %551 = arith.addf %550, %549 : vector<1x256xf32>
    %cst_200 = arith.constant 1.000000e+00 : f32
    %552 = vector.broadcast %cst_200 : f32 to vector<1x256xf32>
    %553 = arith.divf %552, %551 : vector<1x256xf32>
    %c0_201 = arith.constant 0 : index
    %c5 = arith.constant 5 : index
    %c0_202 = arith.constant 0 : index
    %554 = vector.load %arg13[%c0_201, %c5, %c0_202] : memref<1x6x256xf32, #tpu.memory_space<vmem>>, vector<1x1x256xf32>
    %555 = vector.shape_cast %554 : vector<1x1x256xf32> to vector<1x256xf32>
    %556 = vector.shape_cast %553 : vector<1x256xf32> to vector<1x1x256xf32>
    tpu.vector_store %arg13[%c0_201, %c5, %c0_202], %556 {strides = array<i32>} : memref<1x6x256xf32, #tpu.memory_space<vmem>>, vector<1x1x256xf32>,
    %557 = arith.mulf %318, %263 : vector<1x256xf32>
    %cst_203 = arith.constant 1.000000e+00 : f32
    %558 = vector.broadcast %cst_203 : f32 to vector<1x256xf32>
    %559 = arith.subf %558, %318 : vector<1x256xf32>
    %560 = arith.mulf %559, %269 : vector<1x256xf32>
    %561 = arith.addf %557, %560 : vector<1x256xf32>
    %562 = arith.mulf %365, %264 : vector<1x256xf32>
    %cst_204 = arith.constant 1.000000e+00 : f32
    %563 = vector.broadcast %cst_204 : f32 to vector<1x256xf32>
    %564 = arith.subf %563, %365 : vector<1x256xf32>
    %565 = arith.mulf %564, %270 : vector<1x256xf32>
    %566 = arith.addf %562, %565 : vector<1x256xf32>
    %567 = arith.mulf %412, %265 : vector<1x256xf32>
    %cst_205 = arith.constant 1.000000e+00 : f32
    %568 = vector.broadcast %cst_205 : f32 to vector<1x256xf32>
    %569 = arith.subf %568, %412 : vector<1x256xf32>
    %570 = arith.mulf %569, %271 : vector<1x256xf32>
    %571 = arith.addf %567, %570 : vector<1x256xf32>
    %572 = arith.mulf %459, %266 : vector<1x256xf32>
    %cst_206 = arith.constant 1.000000e+00 : f32
    %573 = vector.broadcast %cst_206 : f32 to vector<1x256xf32>
    %574 = arith.subf %573, %459 : vector<1x256xf32>
    %575 = arith.mulf %574, %272 : vector<1x256xf32>
    %576 = arith.addf %572, %575 : vector<1x256xf32>
    %577 = arith.mulf %506, %267 : vector<1x256xf32>
    %cst_207 = arith.constant 1.000000e+00 : f32
    %578 = vector.broadcast %cst_207 : f32 to vector<1x256xf32>
    %579 = arith.subf %578, %506 : vector<1x256xf32>
    %580 = arith.mulf %579, %273 : vector<1x256xf32>
    %581 = arith.addf %577, %580 : vector<1x256xf32>
    %582 = arith.mulf %553, %268 : vector<1x256xf32>
    %cst_208 = arith.constant 1.000000e+00 : f32
    %583 = vector.broadcast %cst_208 : f32 to vector<1x256xf32>
    %584 = arith.subf %583, %553 : vector<1x256xf32>
    %585 = arith.mulf %584, %274 : vector<1x256xf32>
    %586 = arith.addf %582, %585 : vector<1x256xf32>
    %cst_209 = arith.constant 0.000000e+00 : f32
    %587 = vector.broadcast %cst_209 : f32 to vector<1x256xf32>
    %cst_210 = arith.constant 0.446475655 : f32
    %588 = vector.broadcast %cst_210 : f32 to vector<1x256xf32>
    %589 = arith.mulf %588, %561 : vector<1x256xf32>
    %590 = arith.addf %587, %589 : vector<1x256xf32>
    %cst_211 = arith.constant 0.568766773 : f32
    %591 = vector.broadcast %cst_211 : f32 to vector<1x256xf32>
    %592 = arith.mulf %591, %566 : vector<1x256xf32>
    %593 = arith.addf %590, %592 : vector<1x256xf32>
    %cst_212 = arith.constant 0.353633881 : f32
    %594 = vector.broadcast %cst_212 : f32 to vector<1x256xf32>
    %595 = arith.mulf %594, %571 : vector<1x256xf32>
    %596 = arith.addf %593, %595 : vector<1x256xf32>
    %cst_213 = arith.constant -0.0539774522 : f32
    %597 = vector.broadcast %cst_213 : f32 to vector<1x256xf32>
    %598 = arith.mulf %597, %576 : vector<1x256xf32>
    %599 = arith.addf %596, %598 : vector<1x256xf32>
    %cst_214 = arith.constant -0.321225792 : f32
    %600 = vector.broadcast %cst_214 : f32 to vector<1x256xf32>
    %601 = arith.mulf %600, %581 : vector<1x256xf32>
    %602 = arith.addf %599, %601 : vector<1x256xf32>
    %cst_215 = arith.constant 0.316335529 : f32
    %603 = vector.broadcast %cst_215 : f32 to vector<1x256xf32>
    %604 = arith.mulf %603, %586 : vector<1x256xf32>
    %605 = arith.addf %602, %604 : vector<1x256xf32>
    %c0_216 = arith.constant 0 : index
    %c0_217 = arith.constant 0 : index
    %c0_218 = arith.constant 0 : index
    %606 = vector.load %arg12[%c0_216, %c0_217, %c0_218] : memref<1x3x256xf32, #tpu.memory_space<vmem>>, vector<1x1x256xf32>
    %607 = vector.shape_cast %606 : vector<1x1x256xf32> to vector<1x256xf32>
    %608 = vector.shape_cast %605 : vector<1x256xf32> to vector<1x1x256xf32>
    tpu.vector_store %arg12[%c0_216, %c0_217, %c0_218], %608 {strides = array<i32>} : memref<1x3x256xf32, #tpu.memory_space<vmem>>, vector<1x1x256xf32>,
    %cst_219 = arith.constant 0.000000e+00 : f32
    %609 = vector.broadcast %cst_219 : f32 to vector<1x256xf32>
    %cst_220 = arith.constant -0.120953083 : f32
    %610 = vector.broadcast %cst_220 : f32 to vector<1x256xf32>
    %611 = arith.mulf %610, %561 : vector<1x256xf32>
    %612 = arith.addf %609, %611 : vector<1x256xf32>
    %cst_221 = arith.constant 0.366733521 : f32
    %613 = vector.broadcast %cst_221 : f32 to vector<1x256xf32>
    %614 = arith.mulf %613, %566 : vector<1x256xf32>
    %615 = arith.addf %612, %614 : vector<1x256xf32>
    %cst_222 = arith.constant 0.0624824948 : f32
    %616 = vector.broadcast %cst_222 : f32 to vector<1x256xf32>
    %617 = arith.mulf %616, %571 : vector<1x256xf32>
    %618 = arith.addf %615, %617 : vector<1x256xf32>
    %cst_223 = arith.constant 0.292991698 : f32
    %619 = vector.broadcast %cst_223 : f32 to vector<1x256xf32>
    %620 = arith.mulf %619, %576 : vector<1x256xf32>
    %621 = arith.addf %618, %620 : vector<1x256xf32>
    %cst_224 = arith.constant 0.106909916 : f32
    %622 = vector.broadcast %cst_224 : f32 to vector<1x256xf32>
    %623 = arith.mulf %622, %581 : vector<1x256xf32>
    %624 = arith.addf %621, %623 : vector<1x256xf32>
    %cst_225 = arith.constant 0.211971954 : f32
    %625 = vector.broadcast %cst_225 : f32 to vector<1x256xf32>
    %626 = arith.mulf %625, %586 : vector<1x256xf32>
    %627 = arith.addf %624, %626 : vector<1x256xf32>
    %c0_226 = arith.constant 0 : index
    %c1_227 = arith.constant 1 : index
    %c0_228 = arith.constant 0 : index
    %628 = vector.load %arg12[%c0_226, %c1_227, %c0_228] : memref<1x3x256xf32, #tpu.memory_space<vmem>>, vector<1x1x256xf32>
    %629 = vector.shape_cast %628 : vector<1x1x256xf32> to vector<1x256xf32>
    %630 = vector.shape_cast %627 : vector<1x256xf32> to vector<1x1x256xf32>
    tpu.vector_store %arg12[%c0_226, %c1_227, %c0_228], %630 {strides = array<i32>} : memref<1x3x256xf32, #tpu.memory_space<vmem>>, vector<1x1x256xf32>,
    %cst_229 = arith.constant 0.000000e+00 : f32
    %631 = vector.broadcast %cst_229 : f32 to vector<1x256xf32>
    %cst_230 = arith.constant 0.00315000629 : f32
    %632 = vector.broadcast %cst_230 : f32 to vector<1x256xf32>
    %633 = arith.mulf %632, %561 : vector<1x256xf32>
    %634 = arith.addf %631, %633 : vector<1x256xf32>
    %cst_231 = arith.constant 0.535761178 : f32
    %635 = vector.broadcast %cst_231 : f32 to vector<1x256xf32>
    %636 = arith.mulf %635, %566 : vector<1x256xf32>
    %637 = arith.addf %634, %636 : vector<1x256xf32>
    %cst_232 = arith.constant 0.0380736291 : f32
    %638 = vector.broadcast %cst_232 : f32 to vector<1x256xf32>
    %639 = arith.mulf %638, %571 : vector<1x256xf32>
    %640 = arith.addf %637, %639 : vector<1x256xf32>
    %cst_233 = arith.constant 0.120596811 : f32
    %641 = vector.broadcast %cst_233 : f32 to vector<1x256xf32>
    %642 = arith.mulf %641, %576 : vector<1x256xf32>
    %643 = arith.addf %640, %642 : vector<1x256xf32>
    %cst_234 = arith.constant 0.564945221 : f32
    %644 = vector.broadcast %cst_234 : f32 to vector<1x256xf32>
    %645 = arith.mulf %644, %581 : vector<1x256xf32>
    %646 = arith.addf %643, %645 : vector<1x256xf32>
    %cst_235 = arith.constant -0.40432772 : f32
    %647 = vector.broadcast %cst_235 : f32 to vector<1x256xf32>
    %648 = arith.mulf %647, %586 : vector<1x256xf32>
    %649 = arith.addf %646, %648 : vector<1x256xf32>
    %c0_236 = arith.constant 0 : index
    %c2_237 = arith.constant 2 : index
    %c0_238 = arith.constant 0 : index
    %650 = vector.load %arg12[%c0_236, %c2_237, %c0_238] : memref<1x3x256xf32, #tpu.memory_space<vmem>>, vector<1x1x256xf32>
    %651 = vector.shape_cast %650 : vector<1x1x256xf32> to vector<1x256xf32>
    %652 = vector.shape_cast %649 : vector<1x256xf32> to vector<1x1x256xf32>
    tpu.vector_store %arg12[%c0_236, %c2_237, %c0_238], %652 {strides = array<i32>} : memref<1x3x256xf32, #tpu.memory_space<vmem>>, vector<1x1x256xf32>,
    return
  }
  func.func @transform_0(%arg0: i32) -> (i32, i32) {
    %c0_i32 = arith.constant 0 : i32
    %c0_i32_0 = arith.constant 0 : i32
    %c0_i32_1 = arith.constant 0 : i32
    return %c0_i32, %c0_i32_0 : i32, i32
  }
  func.func @transform_1(%arg0: i32) -> (i32, i32, i32) {
    %c0_i32 = arith.constant 0 : i32
    %c0_i32_0 = arith.constant 0 : i32
    %c0_i32_1 = arith.constant 0 : i32
    return %arg0, %c0_i32, %c0_i32_0 : i32, i32, i32
  }
  func.func @transform_2(%arg0: i32) -> (i32, i32, i32) {
    %c0_i32 = arith.constant 0 : i32
    %c0_i32_0 = arith.constant 0 : i32
    %c0_i32_1 = arith.constant 0 : i32
    return %arg0, %c0_i32, %c0_i32_0 : i32, i32, i32
  }
  func.func @transform_3(%arg0: i32) -> (i32, i32, i32) {
    %c0_i32 = arith.constant 0 : i32
    %c0_i32_0 = arith.constant 0 : i32
    %c0_i32_1 = arith.constant 0 : i32
    return %arg0, %c0_i32, %c0_i32_0 : i32, i32, i32
  }
  func.func @transform_4(%arg0: i32) -> (i32, i32, i32) {
    %c0_i32 = arith.constant 0 : i32
    %c0_i32_0 = arith.constant 0 : i32
    %c0_i32_1 = arith.constant 0 : i32
    return %arg0, %c0_i32, %c0_i32_0 : i32, i32, i32
  }
  func.func @transform_5(%arg0: i32) -> (i32, i32, i32) {
    %c0_i32 = arith.constant 0 : i32
    %c0_i32_0 = arith.constant 0 : i32
    %c0_i32_1 = arith.constant 0 : i32
    return %arg0, %c0_i32, %c0_i32_0 : i32, i32, i32
  }
  func.func @transform_6(%arg0: i32) -> (i32, i32, i32) {
    %c0_i32 = arith.constant 0 : i32
    %c0_i32_0 = arith.constant 0 : i32
    %c0_i32_1 = arith.constant 0 : i32
    return %arg0, %c0_i32, %c0_i32_0 : i32, i32, i32
  }
  func.func @transform_7(%arg0: i32) -> (i32, i32, i32) {
    %c0_i32 = arith.constant 0 : i32
    %c0_i32_0 = arith.constant 0 : i32
    %c0_i32_1 = arith.constant 0 : i32
    return %arg0, %c0_i32, %c0_i32_0 : i32, i32, i32
  }
  func.func @transform_8(%arg0: i32) -> (i32, i32, i32) {
    %c0_i32 = arith.constant 0 : i32
    %c0_i32_0 = arith.constant 0 : i32
    %c0_i32_1 = arith.constant 0 : i32
    return %arg0, %c0_i32, %c0_i32_0 : i32, i32, i32
  }
  func.func @transform_9(%arg0: i32) -> (i32, i32, i32) {
    %c0_i32 = arith.constant 0 : i32
    %c0_i32_0 = arith.constant 0 : i32
    %c0_i32_1 = arith.constant 0 : i32
    return %arg0, %c0_i32, %c0_i32_0 : i32, i32, i32
  }
  func.func @transform_10(%arg0: i32) -> (i32, i32, i32) {
    %c0_i32 = arith.constant 0 : i32
    %c0_i32_0 = arith.constant 0 : i32
    %c0_i32_1 = arith.constant 0 : i32
    return %arg0, %c0_i32, %c0_i32_0 : i32, i32, i32
  }
  func.func @transform_11(%arg0: i32) -> (i32, i32, i32) {
    %c0_i32 = arith.constant 0 : i32
    %c0_i32_0 = arith.constant 0 : i32
    %c0_i32_1 = arith.constant 0 : i32
    return %arg0, %c0_i32, %c0_i32_0 : i32, i32, i32
  }
  func.func @transform_12(%arg0: i32) -> (i32, i32, i32) {
    %c0_i32 = arith.constant 0 : i32
    %c0_i32_0 = arith.constant 0 : i32
    %c0_i32_1 = arith.constant 0 : i32
    return %arg0, %c0_i32, %c0_i32_0 : i32, i32, i32
  }
}

</mosaic_0001>

<bundles_post_ra>
// kernel: mvmefnet_forward.1
= control target key start
LH: loop header
LB: loop body
LE: loop exit
PB: predicated region body
PF: predicated region fallthrough
CT: control target
= control target key end

     0   :  { %s2862_s21 = smov 0   ;;  %s4033_s0 = inlined_call_operand.vmem [shape: f32[4,256], index: 0, kind: input, shape index: {}]   ;;  %s4034_s1 = inlined_call_operand.vmem [shape: f32[2,3,256], index: 1, kind: input, shape index: {}]   ;;  %s4035_s2 = inlined_call_operand.vmem [shape: f32[2,3,256], index: 2, kind: input, shape index: {}]   ;;  %s4036_s3 = inlined_call_operand.vmem [shape: f32[2,3,256], index: 3, kind: input, shape index: {}]   ;;  %s4037_s4 = inlined_call_operand.vmem [shape: f32[2,3,256], index: 4, kind: input, shape index: {}]   ;;  %s4038_s5 = inlined_call_operand.vmem [shape: f32[2,3,256], index: 5, kind: input, shape index: {}]   ;;  %s4039_s6 = inlined_call_operand.vmem [shape: f32[2,3,256], index: 6, kind: input, shape index: {}]   ;;  %s4040_s7 = inlined_call_operand.vmem [shape: f32[2,1,256], index: 7, kind: output, shape index: {0}]   ;;  %s4041_s8 = inlined_call_operand.vmem [shape: f32[2,1,256], index: 8, kind: output, shape index: {1}]   ;;  %s4042_s9 = inlined_call_operand.vmem [shape: f32[2,1,256], index: 9, kind: output, shape index: {2}]   ;;  %s4043_s10 = inlined_call_operand.vmem [shape: f32[2,3,256], index: 10, kind: output, shape index: {3}]   ;;  %s4044_s11 = inlined_call_operand.vmem [shape: f32[2,3,256], index: 11, kind: output, shape index: {4}]   ;;  %s4045_s12 = inlined_call_operand.vmem [shape: f32[2,6,256], index: 12, kind: output, shape index: {5}]  }
   0x1 LB: > { %s2647_s22 = sadd.s32 4294967295, %s2786_s21   ;;  %p2651_p0 = scmp.ge.s32.totalorder %s2786_s21, 1  ;;  %s2786_s21 = sphi %s2862_s21, %s23_s21  }
   0x2   : > { %p423_p1 = scmp.lt.s32.totalorder %s2786_s21, 3 }
   0x4   : > { %p424_p2 = pnand %p2651_p0, %p423_p1 }
   0x6   : > { %427 = sbr.rel (%p424_p2) target bundleno = 448 (0x1c0), region = 48 }
   0xd   : > { %p512_p3 = scmp.lt.s32.totalorder %s2647_s22, 1  ;;  %v4046_v0 = vlaneseq  ;;  %v2788_v2 = vmov 1966171168   ;;  %s2789_s30 = smov 112   ;;  %v3004_v39 = vld [vmem:[%s4033_s0] sm:$0xff] }
   0xe   : > { %v2886_v3 = vunpack.c.l.s4 %v2788_v2  ;;  %s2790_s13 = smov 16   ;;  %s2792_s27 = smov 127  }
   0xf   : > { %s4220_s22 = smov (!%p512_p3, %s2647_s22), 1  ;;  %v2873_v1 = vshrl.u32 %v4046_v0, 7  ;;  %s2795_s14 = smov 124  }
  0x10   : > { %s2876_s23 = sshll.u32 %s4220_s22, 3  ;;  %s2697_s17 = sshll.u32 %s4220_s22, 4 }
  0x11   : > { %s536_s26 = scalar_lea.vmem %s4038_s5, %s2876_s23  ;;  %s541_s29 = scalar_lea.vmem %s4039_s6, %s2876_s23  ;;  %v2893_v6 = vsub.s32 2, %v2873_v1  ;;  %v2907_v9 = vsub.s32 6, %v2873_v1  ;;  %v2910_v10 = vsub.s32 0, %v2873_v1  ;;  %v2916_v12 = vsub.s32 4, %v2873_v1 }
  0x12   : > { %v2888_v4 = vld [vmem:[%s536_s26] sm:$0x77]  ;;  %v2919_v13 = vsub.s32 1, %v2873_v1  ;;  %v2922_v14 = vsub.s32 5, %v2873_v1  ;;  %s516_s16 = scalar_lea.vmem %s4034_s1, %s2876_s23  ;;  %s521_s19 = scalar_lea.vmem %s4035_s2, %s2876_s23 }
  0x13   : > { %v2890_v5 = vld [vmem:[%s541_s29] sm:$0x77]  ;;  %796 = vrot.lane.b32.xlu1 %v2888_v4, %s2789_s30  ;;  %765 = vrot.lane.b32.xlu0 %v2888_v4, %s2790_s13  ;;  %v2904_v8 = vcombine.high %v2888_v4, %v2888_v4  ;;  %s526_s25 = scalar_lea.vmem %s4036_s3, %s2876_s23  ;;  %s531_s28 = scalar_lea.vmem %s4037_s4, %s2876_s23  ;;  %v745_v47 = vrot.slane %v3004_v39, %v2910_v10  ;;  %v749_v35 = vrot.slane %v3004_v39, %v2916_v12 }
  0x14   : > { %4090 = vst [vmem:[#allocation2_spill] sm:$0xff] %v2890_v5  ;;  %v2896_v7 = vmul.f32 -0.26863998, %v2890_v5  ;;  %v2913_v11 = vmul.f32 -0.48416936, %v2890_v5  ;;  %s2791_s26 = smov 1  }
  0x15   : > { %v2925_v15 = vmul.f32 -0.06382208, %v2890_v5  ;;  %v2928_v16 = vmul.f32 -0.008454668, %v2890_v5  ;;  %v2931_v17 = vmul.f32 0.019955168, %v2890_v5  ;;  %v3130_v41 = vrot.slane %v745_v47, %v2910_v10 }
  0x16   : > { %v2936_v19 = vmul.f32 0.12849957, %v2890_v5  ;;  %v2939_v20 = vmul.f32 -0.20173813, %v2890_v5  ;;  %v2942_v21 = vmul.f32 -0.24394388, %v2890_v5  ;;  %v759_v47 = vrot.slane %v749_v35, %v2910_v10 }
  0x17   : > { %v2955_v23 = vmul.f32 -0.10786595, %v2890_v5  ;;  %v2958_v24 = vmul.f32 -0.4890595, %v2890_v5  ;;  %v2961_v25 = vmul.f32 -0.2721895, %v2890_v5  ;;  %798 = vrot.lane.b32.xlu1 %v2904_v8, %s2789_s30  ;;  %767 = vrot.lane.b32.xlu0 %v2904_v8, %s2790_s13  ;;  %v3149_v30 = vmul.f32 %v3130_v41, %v2888_v4 }
  0x18   : > { %v2974_v27 = vmul.f32 0.13883467, %v2890_v5  ;;  %v2977_v28 = vmul.f32 0.3418202, %v2890_v5  ;;  %v2980_v29 = vmul.f32 0.12070249, %v2890_v5 }
  0x19   : > { %4091 = vst [vmem:[#allocation3_spill] sm:$0xff] %v2961_v25  ;;  %v2989_v31 = vmul.f32 -0.34954494, %v2890_v5  ;;  %v571_v32 = vld [vmem:[%s516_s16] sm:$0x77]  ;;  %s2794_s29 = smov 125  }
  0x1a   : > { %4092 = vst [vmem:[#allocation4_spill] sm:$0xff] %v2974_v27  ;;  %4093 = vst [vmem:[#allocation5_spill] sm:$0xff] %v2977_v28  ;;  %v572_v33 = vld [vmem:[%s521_s19] sm:$0x77]  ;;  %v3013_v43 = vmul.f32 -0.37044775, %v2890_v5 }
  0x1b   : > { %4094 = vst [vmem:[#allocation6_spill] sm:$0xff] %v2980_v29  ;;  %4095 = vst [vmem:[#allocation7_spill] sm:$0xff] %v2989_v31  ;;  %v2997_v37 = vsub.f32 %v571_v32, %v572_v33  ;;  %v2999_v38 = vld [vmem:[%s526_s25] sm:$0x77]  ;;  %v3016_v44 = vmul.f32 -0.09346576, %v2890_v5 }
  0x1c   : > { %4096 = vst [vmem:[#allocation8_spill] sm:$0xff] %v3013_v43  ;;  %v3018_v45 = vld [vmem:[%s531_s28] sm:$0x77]  ;;  %1034 = vrot.lane.b32.xlu0 %v2999_v38, %s2790_s13  ;;  %v3024_v46 = vcombine.high %v2999_v38, %v2999_v38  ;;  %v3041_v56 = vmul.f32 0.016849604, %v2890_v5  ;;  %v3260_v4 = vmul.f32 %v2999_v38, %v3130_v41  ;;  %s2793_s28 = smov 126  }
  0x1d   : > { %4097 = vst [vmem:[#allocation9_spill] sm:$0xff] %v3016_v44  ;;  %4098 = vst [vmem:[#allocation10_spill] sm:$0xff] %v3018_v45  ;;  %v574_v48 = vmul.f32 0.8820262, %v2997_v37  ;;  %v576_v49 = vmul.f32 0.2000786, %v2997_v37 }
  0x1e   : > { %v582_v50 = vmul.f32 0.489369, %v2997_v37  ;;  %v595_v52 = vmul.f32 1.1204466, %v2997_v37  ;;  %v597_v53 = vmul.f32 0.933779, %v2997_v37  ;;  %1036 = vrot.lane.b32.xlu1 %v3024_v46, %s2790_s13 }
  0x1f   : > { %v603_v54 = vmul.f32 -0.48863894, %v2997_v37  ;;  %4099 = vst [vmem:[#allocation11_spill] sm:$0xff] %v3041_v56  ;;  %v575_v57 = vadd.f32 0.04105985, %v574_v48  ;;  %v2673_v58 = vrot.slane %v576_v49, 9 }
  0x20   : > { %v2674_v59 = vrot.slane %v582_v50, 10  ;;  %v596_v60 = vadd.f32 0.014404357, %v595_v52  ;;  %v2675_v61 = vrot.slane %v597_v53, 9  ;;  %v3044_v63 = vmul.f32 0.11607075, %v3018_v45  ;;  %1044 = vrot.lane.b32.xlu0 %v2999_v38, %s2789_s30 }
  0x21   : > { %v2676_v62 = vrot.slane %v603_v54, 10  ;;  %v581_v2 = vadd.f32 %v2673_v58, %v575_v57  ;;  %v3049_v32 = vmul.f32 -0.15324154, %v3018_v45  ;;  %v3052_v33 = vmul.f32 -0.35418966, %v3018_v45 }
  0x22   : > { %v3055_v48 = vmul.f32 0.09074157, %v3018_v45  ;;  %v602_v49 = vadd.f32 %v2675_v61, %v596_v60  ;;  %v3058_v50 = vmul.f32 -0.19029664, %v3018_v45  ;;  %v3061_v52 = vmul.f32 -0.10882235, %v3018_v45  ;;  %1046 = vrot.lane.b32.xlu1 %v3024_v46, %s2789_s30 }
  0x23   : > { %v3064_v53 = vmul.f32 -0.5178848, %v3018_v45  ;;  %v587_v54 = vadd.f32 %v2674_v59, %v581_v2  ;;  %v3069_v57 = vmul.f32 0.05322784, %v3018_v45  ;;  %v3072_v58 = vmul.f32 -0.12053428, %v3018_v45 }
  0x24   : > { %v3075_v60 = vmul.f32 0.015583619, %v3018_v45  ;;  %v608_v61 = vadd.f32 %v2676_v62, %v602_v49  ;;  %v3078_v55 = vmul.f32 0.21872717, %v3018_v45  ;;  %v3081_v51 = vmul.f32 0.038694873, %v3018_v45 }
  0x25   : > { %v3084_v42 = vmul.f32 -0.1736549, %v3018_v45  ;;  %v588_v59 = vsub.f32 0.0, %v587_v54  ;;  %v3087_v2 = vmul.f32 -0.4608731, %v3018_v45  ;;  %v3200_v49 = vmul.f32 %v2904_v8, %v759_v47  ;;  %s3270_s30 = sshll.u32 %s4220_s22, 1 }
  0x26   : > { %4100 = vst [vmem:[#allocation12_spill] sm:$0xff] %v3075_v60  ;;  %4101 = vst [vmem:[#allocation13_spill] sm:$0xff] %v3078_v55  ;;  %v609_v62 = vsub.f32 0.0, %v608_v61  ;;  %v3144_v34 = vmul.f32 0.13969873, %v3018_v45  ;;  %s545_s16 = scalar_lea.vmem %s4040_s7, %s3270_s30  ;;  %s549_s19 = scalar_lea.vmem %s4041_s8, %s3270_s30 }
  0x27   : > { %4102 = vst [vmem:[#allocation14_spill] sm:$0xff] %v3081_v51  ;;  %4103 = vst [vmem:[#allocation15_spill] sm:$0xff] %v3084_v42  ;;  %v589_v54 = vmul.f32 1.442695, %v588_v59  ;;  %v3127_v59 = vmul.f32 -0.26123914, %v3018_v45  ;;  %s553_s25 = scalar_lea.vmem %s4042_s9, %s3270_s30 }
  0x28   : > { %4104 = vst [vmem:[#allocation16_spill] sm:$0xff] %v3087_v2  ;;  %v610_v61 = vmul.f32 1.442695, %v609_v62  ;;  %v3135_v62 = vmul.f32 0.27024794, %v3018_v45  ;;  %4108 = vst [vmem:[#allocation20_spill] sm:$0xff] %v3144_v34 }
  0x29   : > { %2720 = vpow2.f32 %v589_v54  ;;  %v3124_v54 = vmul.f32 -0.20544302, %v3018_v45  ;;  %4106 = vst [vmem:[#allocation18_spill] sm:$0xff] %v3127_v59  ;;  %v616_v22 = vmul.f32 0.47504422, %v2997_v37  ;;  %s2796_s30 = smov 123  }
  0x2a   : > { %2722 = vpow2.f32 %v610_v61  ;;  %4107 = vst [vmem:[#allocation19_spill] sm:$0xff] %v3135_v62  ;;  %v618_v26 = vmul.f32 -0.0756786, %v2997_v37  ;;  %v624_v8 = vmul.f32 -0.051609427, %v2997_v37 }
  0x2b   : > { %4105 = vst [vmem:[#allocation17_spill] sm:$0xff] %v3124_v54  ;;  %v617_v18 = vadd.f32 0.14542735, %v616_v22 }
  0x2c   : > { %v2678_v35 = vrot.slane %v624_v8, 10  ;;  %v4110_v8 = vlaneseq }
  0x2e   : > { %vm3287_vm0 = vcmp.lt.s32.totalorder %v4110_v8, 256 }
  0x33   : > { %v2721_v36 = vpop.eup %2720 }
  0x34   : > { %v2723_v40 = vpop.eup %2722  ;;  %v591_v61 = vadd.f32 1.0, %v2721_v36 }
  0x35   : > { %v612_v0 = vadd.f32 1.0, %v2723_v40  ;;  %v640_v40 = vunpack.c.0.s8 %v2886_v3 }
  0x36   : > { %2724 = vrcp.f32 %v591_v61  ;;  %v2677_v61 = vrot.slane %v618_v26, 9 }
  0x37   : > { %2726 = vrcp.f32 %v612_v0  ;;  %v3263_v0 = vmul.f32 %v3024_v46, %v759_v47  ;;  %v3273_v38 = vsub.s32 %v640_v40, %v2873_v1 }
  0x38   : > { %v623_v3 = vadd.f32 %v2677_v61, %v617_v18  ;;  %v4111_v18 = vmov 0 }
  0x39   : > { %4109 = vst [vmem:[#allocation21_spill] sm:$0xff] %v3273_v38  ;;  %v4112_v18 = vsel %vm3287_vm0, 4294967295, %v4111_v18 }
  0x3a   : > { %v629_v45 = vadd.f32 %v2678_v35, %v623_v3  ;;  %4113 = vst [vmem:[#allocation22_spill] sm:$0xff] %v4112_v18 }
  0x3c   : > { %v630_v37 = vsub.f32 0.0, %v629_v45 }
  0x3e   : > { %v631_v35 = vmul.f32 1.442695, %v630_v37 }
  0x40   : > { %v2725_v2 = vpop.eup %2724  ;;  %2728 = vpow2.f32 %v631_v35 }
  0x41   : > { %v2727_v36 = vpop.eup %2726  ;;  %v594_v41 = vmul.f32 3.0, %v2725_v2 }
  0x42   : > { %v615_v46 = vmul.f32 3.0, %v2727_v36 }
  0x43   : > { %v644_v47 = vrot.slane %v594_v41, %v3273_v38 }
  0x44   : > { %v665_v22 = vrot.slane %v615_v46, %v3273_v38 }
  0x45   : > { %v651_v26 = vrot.slane %v644_v47, %v3273_v38  ;;  %v2698_v47 = vtrunc.f32 %v3004_v39 }
  0x46   : > { %v672_v2 = vrot.slane %v665_v22, %v3273_v38 }
  0x47   : > { %657 = vst.msk [vmem:[%s545_s16] sm:$0x3] %vm3287_vm0, %v651_v26  ;;  %v2699_v5 = vcvt.f32.s32 %v2698_v47  ;;  %s558_s16 = scalar_lea.vmem %s4043_s10, %s2876_s23 }
  0x48   : > { %674 = vst.msk [vmem:[%s549_s19] sm:$0x3] %vm3287_vm0, %v672_v2  ;;  %s3832_s19 = scalar_lea.vmem %s4045_s12, %s2697_s17 }
  0x4a   : > { %v2729_v36 = vpop.eup %2728 }
  0x4b   : > { %v633_v40 = vadd.f32 1.0, %v2729_v36 }
  0x4d   : > { %2730 = vrcp.f32 %v633_v40  ;;  %v3305_v40 = vsub.s32 3, %v2873_v1 }
  0x57   : > { %v2731_v61 = vpop.eup %2730 }
  0x58   : > { %v636_v45 = vmul.f32 3.0, %v2731_v61 }
  0x5a   : > { %v692_v41 = vrot.slane %v636_v45, 5 }
  0x5c   : > { %v694_v3 = vadd.f32 %v692_v41, %v3004_v39 }
  0x5e   : > { %v695_v46 = vmul.f32 1.0666667, %v694_v3 }
  0x60   : > { %v2679_v22 = vadd.f32 -0.5, %v695_v46 }
  0x62   : > { %v697_v34 = vfloor.f32 %v2679_v22 }
  0x64   : > { %v698_v26 = vsub.f32 %v2679_v22, %v697_v34  ;;  %v2700_v37 = vtrunc.f32 %v697_v34  ;;  %v3308_v34 = vsub.s32 7, %v2873_v1 }
  0x66   : > { %v699_v62 = vsub.f32 1.0, %v698_v26  ;;  %v2701_v31 = vcvt.f32.s32 %v2700_v37  ;;  %v3328_v37 = vand.u32 127, %v4110_v8 }
  0x68   : > { %v701_v2 = vadd.s32 1, %v2701_v31  ;;  %vm702_vm1 = vcmp.ge.s32.totalorder %v2701_v31, 0  ;;  %vm703_vm2 = vcmp.le.s32.totalorder %v2701_v31, 15  ;;  %v3298_v35 = vsub.s32 %v2701_v31, %v2699_v5 }
  0x69   : > { %vm704_vm3 = vmand %vm702_vm1, %vm703_vm2  ;;  %vm800_vm11 = vcmp.lt.s32.totalorder %v3328_v37, 112  ;;  %vm771_vm12 = vcmp.lt.s32.totalorder %v3328_v37, 16  ;;  %vm829_vm2 = vcmp.lt.s32.totalorder %v3328_v37, 1 }
  0x6a   : > { %v3300_v36 = vsel %vm704_vm3, %v699_v62, 0.0  ;;  %vm706_vm4 = vcmp.ge.s32.totalorder %v701_v2, 0  ;;  %vm707_vm5 = vcmp.le.s32.totalorder %v701_v2, 15  ;;  %vm711_vm6 = vcmp.eq.s32.totalorder %v3298_v35, 4294967295 }
  0x6b   : > { %vm708_vm7 = vmand %vm706_vm4, %vm707_vm5  ;;  %vm716_vm8 = vcmp.eq.s32.totalorder %v3298_v35, 0  ;;  %vm713_vm9 = vcmp.eq.s32.totalorder %v3298_v35, 4294967294  ;;  %v712_v47 = vsel %vm711_vm6, %v3300_v36, 0.0  ;;  %vm720_vm10 = vcmp.eq.s32.totalorder %v3298_v35, 1 }
  0x6c   : > { %v3310_v61 = vsel %vm708_vm7, %v698_v26, 0.0  ;;  %v717_v5 = vsel %vm716_vm8, %v3300_v36, 0.0  ;;  %vm724_vm13 = vcmp.eq.s32.totalorder %v3298_v35, 2  ;;  %vm728_vm14 = vcmp.eq.s32.totalorder %v3298_v35, 3 }
  0x6d   : > { %v718_v31 = vsel %vm711_vm6, %v3310_v61, 0.0  ;;  %v714_v22 = vsel %vm713_vm9, %v3310_v61, 0.0  ;;  %vm732_vm15 = vcmp.eq.s32.totalorder %v3298_v35, 4  ;;  %vm736_vm1 = vcmp.eq.s32.totalorder %v3298_v35, 5 }
  0x6e   : > { %v719_v62 = vadd.f32 %v718_v31, %v717_v5  ;;  %v715_v26 = vadd.f32 %v714_v22, %v712_v47  ;;  %v806_v31 = vrot.slane %v3004_v39, %v2893_v6  ;;  %v810_v22 = vrot.slane %v3004_v39, %v2907_v9 }
  0x6f   : > { %vm882_vm3 = vcmp.lt.s32.totalorder %v3328_v37, 127  ;;  %vm912_vm4 = vcmp.lt.s32.totalorder %v3328_v37, 126  ;;  %vm942_vm5 = vcmp.lt.s32.totalorder %v3328_v37, 125  ;;  %vm972_vm6 = vcmp.lt.s32.totalorder %v3328_v37, 124 }
  0x70   : > { %v859_v41 = vrot.slane %v719_v62, %v3305_v40  ;;  %v863_v3 = vrot.slane %v719_v62, %v3308_v34  ;;  %v836_v2 = vrot.slane %v715_v26, %v3305_v40  ;;  %v840_v5 = vrot.slane %v715_v26, %v3308_v34 }
  0x71   : > { %v777_v62 = vrot.slane %v3004_v39, %v2919_v13  ;;  %v721_v26 = vsel %vm720_vm10, %v3300_v36, 0.0  ;;  %v3361_v59 = vrot.slane %v806_v31, %v2893_v6  ;;  %v725_v31 = vsel %vm724_vm13, %v3300_v36, 0.0 }
  0x72   : > { %v3319_v46 = vrot.slane %v859_v41, %v3305_v40  ;;  %v3322_v1 = vrot.slane %v863_v3, %v3305_v40  ;;  %v781_v41 = vrot.slane %v3004_v39, %v2922_v14  ;;  %v682_v3 = vrot.slane %v636_v45, %v3273_v38 }
  0x73   : > { %v3341_v8 = vrot.slane %v836_v2, %v3305_v40  ;;  %v3344_v47 = vrot.slane %v840_v5, %v3305_v40  ;;  %v722_v45 = vsel %vm716_vm8, %v3310_v61, 0.0  ;;  %v787_v39 = vrot.slane %v777_v62, %v2919_v13 }
  0x74   : > { %v689_v5 = vrot.slane %v682_v3, %v3273_v38  ;;  %v723_v42 = vadd.f32 %v722_v45, %v721_v26  ;;  %v791_v44 = vrot.slane %v781_v41, %v2919_v13  ;;  %v820_v3 = vrot.slane %v810_v22, %v2893_v6 }
  0x75   : > { %v726_v62 = vsel %vm720_vm10, %v3310_v61, 0.0  ;;  %vm1002_vm7 = vcmp.lt.s32.totalorder %v3328_v37, 123 }
  0x76   : > { %691 = vst.msk [vmem:[%s553_s25] sm:$0x3] %vm3287_vm0, %v689_v5  ;;  %v889_v54 = vrot.slane %v723_v42, %v3305_v40  ;;  %v893_v51 = vrot.slane %v723_v42, %v3308_v34  ;;  %v727_v18 = vadd.f32 %v726_v62, %v725_v31  ;;  %s563_s25 = scalar_lea.vmem %s4044_s11, %s2876_s23 }
  0x78   : > { %v3379_v41 = vrot.slane %v889_v54, %v3305_v40  ;;  %v3382_v5 = vrot.slane %v893_v51, %v3305_v40  ;;  %v919_v51 = vrot.slane %v727_v18, %v3305_v40  ;;  %v923_v31 = vrot.slane %v727_v18, %v3308_v34 }
  0x7a   : > { %v3408_v18 = vrot.slane %v923_v31, %v3305_v40 }
  0x85   : > { %v797_v2 = vpop.permute.xlu1 %796  ;;  %v766_v56 = vpop.permute.xlu0 %765 }
  0x89   : > { %v799_v26 = vpop.permute.xlu1 %798  ;;  %v768_v45 = vpop.permute.xlu0 %767 }
  0x8a   : > { %v801_v42 = vsel %vm800_vm11, %v797_v2, %v799_v26  ;;  %v802_v38 = vsel %vm800_vm11, %v799_v26, %v797_v2  ;;  %v772_v22 = vsel %vm771_vm12, %v766_v56, %v768_v45  ;;  %v773_v29 = vsel %vm771_vm12, %v768_v45, %v766_v56 }
  0x8b   : > { %v821_v55 = vmul.f32 %v3361_v59, %v801_v42  ;;  %v792_v54 = vmul.f32 %v787_v39, %v773_v29  ;;  %v793_v43 = vmul.f32 %v791_v44, %v772_v22  ;;  %v822_v60 = vmul.f32 %v820_v3, %v802_v38 }
  0x8c   : > { %v729_v56 = vsel %vm728_vm14, %v3300_v36, 0.0  ;;  %v730_v29 = vsel %vm724_vm13, %v3310_v61, 0.0  ;;  %v3405_v38 = vrot.slane %v919_v51, %v3305_v40  ;;  %v733_v42 = vsel %vm732_vm15, %v3300_v36, 0.0 }
  0x8d   : > { %v794_v62 = vadd.f32 %v792_v54, %v3149_v30  ;;  %v795_v2 = vadd.f32 %v793_v43, %v3200_v49  ;;  %v731_v45 = vadd.f32 %v730_v29, %v729_v56  ;;  %v734_v56 = vsel %vm728_vm14, %v3310_v61, 0.0 }
  0x8e   : > { %v1035_v26 = vpop.permute.xlu0 %1034 }
  0x8f   : > { %v823_v30 = vadd.f32 %v821_v55, %v794_v62  ;;  %v824_v43 = vadd.f32 %v822_v60, %v795_v2  ;;  %v949_v51 = vrot.slane %v731_v45, %v3305_v40  ;;  %v953_v31 = vrot.slane %v731_v45, %v3308_v34 }
  0x90   : > { %v1037_v49 = vpop.permute.xlu1 %1036 }
  0x91   : > { %v1038_v22 = vsel %vm771_vm12, %v1035_v26, %v1037_v49  ;;  %v1039_v54 = vsel %vm771_vm12, %v1037_v49, %v1035_v26  ;;  %825 = vrot.lane.b32.xlu0 %v823_v30, %s2791_s26  ;;  %827 = vrot.lane.b32.xlu1 %v824_v43, %s2791_s26  ;;  %v3423_v2 = vmul.f32 %v3319_v46, %v823_v30 }
  0x92   : > { %v1040_v55 = vmul.f32 %v1039_v54, %v787_v39  ;;  %v1041_v60 = vmul.f32 %v1038_v22, %v791_v44  ;;  %v1045_v62 = vpop.permute.xlu0 %1044  ;;  %v3429_v26 = vmul.f32 %v3322_v1, %v824_v43  ;;  %v3432_v29 = vrot.slane %v949_v51, %v3305_v40 }
  0x93   : > { %v3435_v45 = vrot.slane %v953_v31, %v3305_v40  ;;  %v735_v49 = vadd.f32 %v734_v56, %v733_v42  ;;  %v737_v42 = vsel %vm736_vm1, %v3300_v36, 0.0  ;;  %v738_v31 = vsel %vm732_vm15, %v3310_v61, 0.0 }
  0x94   : > { %v1042_v44 = vadd.f32 %v1040_v55, %v3260_v4  ;;  %v1043_v39 = vadd.f32 %v1041_v60, %v3263_v0  ;;  %v1047_v22 = vpop.permute.xlu1 %1046 }
  0x95   : > { %v1048_v54 = vsel %vm800_vm11, %v1045_v62, %v1047_v22  ;;  %v1049_v28 = vsel %vm800_vm11, %v1047_v22, %v1045_v62  ;;  %v979_v51 = vrot.slane %v735_v49, %v3305_v40  ;;  %v983_v25 = vrot.slane %v735_v49, %v3308_v34  ;;  %878 = vrot.lane.b32.xlu0 %v823_v30, %s2792_s27 }
  0x96   : > { %880 = vrot.lane.b32.xlu1 %v824_v43, %s2792_s27  ;;  %v1050_v4 = vmul.f32 %v1048_v54, %v3361_v59  ;;  %v1051_v0 = vmul.f32 %v1049_v28, %v820_v3  ;;  %v739_v62 = vadd.f32 %v738_v31, %v737_v42 }
  0x97   : > { %v3454_v55 = vrot.slane %v979_v51, %v3305_v40  ;;  %v3457_v60 = vrot.slane %v983_v25, %v3305_v40 }
  0x98   : > { %v1052_v56 = vadd.f32 %v1050_v4, %v1042_v44  ;;  %v1053_v49 = vadd.f32 %v1051_v0, %v1043_v39  ;;  %v1009_v22 = vrot.slane %v739_v62, %v3305_v40  ;;  %v1013_v59 = vrot.slane %v739_v62, %v3308_v34 }
  0x99   : > { %908 = vrot.lane.b32.xlu0 %v823_v30, %s2793_s28 }
  0x9a   : > { %910 = vrot.lane.b32.xlu1 %v824_v43, %s2793_s28  ;;  %v3462_v28 = vmul.f32 %v1052_v56, %v3319_v46  ;;  %v3465_v35 = vmul.f32 %v1053_v49, %v3322_v1  ;;  %v3468_v36 = vrot.slane %v1009_v22, %v3305_v40  ;;  %v3471_v25 = vrot.slane %v1013_v59, %v3305_v40 }
  0x9d   : > { %938 = vrot.lane.b32.xlu0 %v823_v30, %s2794_s29 }
  0x9e   : > { %940 = vrot.lane.b32.xlu1 %v824_v43, %s2794_s29 }
  0xa1   : > { %968 = vrot.lane.b32.xlu0 %v823_v30, %s2795_s14 }
  0xa2   : > { %970 = vrot.lane.b32.xlu1 %v824_v43, %s2795_s14 }
  0xa5   : > { %998 = vrot.lane.b32.xlu0 %v823_v30, %s2796_s30 }
  0xa6   : > { %1000 = vrot.lane.b32.xlu1 %v824_v43, %s2796_s30 }
  0xa9   : > { %1054 = vrot.lane.b32.xlu0 %v1052_v56, %s2791_s26 }
  0xaa   : > { %1056 = vrot.lane.b32.xlu1 %v1053_v49, %s2791_s26 }
  0xad   : > { %1068 = vrot.lane.b32.xlu0 %v1052_v56, %s2792_s27 }
  0xae   : > { %1070 = vrot.lane.b32.xlu1 %v1053_v49, %s2792_s27 }
  0xb1   : > { %1078 = vrot.lane.b32.xlu0 %v1052_v56, %s2793_s28 }
  0xb2   : > { %1080 = vrot.lane.b32.xlu1 %v1053_v49, %s2793_s28 }
  0xb5   : > { %1088 = vrot.lane.b32.xlu0 %v1052_v56, %s2794_s29 }
  0xb6   : > { %1090 = vrot.lane.b32.xlu1 %v1053_v49, %s2794_s29 }
  0xb9   : > { %1098 = vrot.lane.b32.xlu0 %v1052_v56, %s2795_s14 }
  0xba   : > { %1100 = vrot.lane.b32.xlu1 %v1053_v49, %s2795_s14 }
  0xbd   : > { %1108 = vrot.lane.b32.xlu0 %v1052_v56, %s2796_s30 }
  0xbe   : > { %1110 = vrot.lane.b32.xlu1 %v1053_v49, %s2796_s30 }
 0x103   : > { %v826_v40 = vpop.permute.xlu0 %825  ;;  %v828_v34 = vpop.permute.xlu1 %827 }
 0x104   : > { %v830_v61 = vsel %vm829_vm2, %v826_v40, %v828_v34  ;;  %v831_v46 = vsel %vm829_vm2, %v828_v34, %v826_v40 }
 0x105   : > { %v851_v1 = vmul.f32 %v3341_v8, %v831_v46  ;;  %v852_v3 = vmul.f32 %v3344_v47, %v830_v61 }
 0x107   : > { %v876_v30 = vadd.f32 %v3423_v2, %v851_v1  ;;  %v877_v43 = vadd.f32 %v3429_v26, %v852_v3  ;;  %v879_v44 = vpop.permute.xlu0 %878 }
 0x108   : > { %v881_v39 = vpop.permute.xlu1 %880 }
 0x109   : > { %v883_v54 = vsel %vm882_vm3, %v879_v44, %v881_v39  ;;  %v884_v51 = vsel %vm882_vm3, %v881_v39, %v879_v44 }
 0x10a   : > { %v904_v4 = vmul.f32 %v3379_v41, %v883_v54  ;;  %v905_v0 = vmul.f32 %v3382_v5, %v884_v51 }
 0x10b   : > { %v909_v62 = vpop.permute.xlu0 %908 }
 0x10c   : > { %v906_v42 = vadd.f32 %v904_v4, %v876_v30  ;;  %v907_v31 = vadd.f32 %v905_v0, %v877_v43  ;;  %v911_v2 = vpop.permute.xlu1 %910 }
 0x10d   : > { %v913_v26 = vsel %vm912_vm4, %v909_v62, %v911_v2  ;;  %v914_v56 = vsel %vm912_vm4, %v911_v2, %v909_v62 }
 0x10e   : > { %v934_v49 = vmul.f32 %v3405_v38, %v913_v26  ;;  %v935_v22 = vmul.f32 %v3408_v18, %v914_v56 }
 0x10f   : > { %v939_v34 = vpop.permute.xlu0 %938 }
 0x110   : > { %v936_v59 = vadd.f32 %v934_v49, %v906_v42  ;;  %v937_v40 = vadd.f32 %v935_v22, %v907_v31  ;;  %v941_v61 = vpop.permute.xlu1 %940 }
 0x111   : > { %v943_v46 = vsel %vm942_vm5, %v939_v34, %v941_v61  ;;  %v944_v1 = vsel %vm942_vm5, %v941_v61, %v939_v34 }
 0x112   : > { %v964_v3 = vmul.f32 %v3432_v29, %v943_v46  ;;  %v965_v30 = vmul.f32 %v3435_v45, %v944_v1 }
 0x113   : > { %v969_v39 = vpop.permute.xlu0 %968 }
 0x114   : > { %v966_v43 = vadd.f32 %v964_v3, %v936_v59  ;;  %v967_v44 = vadd.f32 %v965_v30, %v937_v40  ;;  %v971_v54 = vpop.permute.xlu1 %970 }
 0x115   : > { %v973_v51 = vsel %vm972_vm6, %v969_v39, %v971_v54  ;;  %v974_v4 = vsel %vm972_vm6, %v971_v54, %v969_v39 }
 0x116   : > { %v994_v0 = vmul.f32 %v3454_v55, %v973_v51  ;;  %v995_v42 = vmul.f32 %v3457_v60, %v974_v4 }
 0x117   : > { %v999_v2 = vpop.permute.xlu0 %998 }
 0x118   : > { %v996_v31 = vadd.f32 %v994_v0, %v966_v43  ;;  %v997_v62 = vadd.f32 %v995_v42, %v967_v44  ;;  %v1001_v26 = vpop.permute.xlu1 %1000 }
 0x119   : > { %v1003_v56 = vsel %vm1002_vm7, %v999_v2, %v1001_v26  ;;  %v1004_v49 = vsel %vm1002_vm7, %v1001_v26, %v999_v2 }
 0x11a   : > { %v1024_v22 = vmul.f32 %v3468_v36, %v1003_v56  ;;  %v1025_v59 = vmul.f32 %v3471_v25, %v1004_v49  ;;  %v4114_v56 = vrot.slane %v2913_v11, %v2910_v10 }
 0x11b   : > { %v1055_v61 = vpop.permute.xlu0 %1054 }
 0x11c   : > { %v3521_v40 = vadd.f32 %v1024_v22, %v996_v31  ;;  %v3523_v34 = vadd.f32 %v1025_v59, %v997_v62  ;;  %v1057_v46 = vpop.permute.xlu1 %1056  ;;  %v4115_v59 = vrot.slane %v2913_v11, %v2916_v12 }
 0x11d   : > { %v1058_v1 = vsel %vm829_vm2, %v1055_v61, %v1057_v46  ;;  %v1059_v3 = vsel %vm829_vm2, %v1057_v46, %v1055_v61 }
 0x11e   : > { %v1120_v30 = vcombine.low %v3521_v40, %v3523_v34  ;;  %v1060_v43 = vmul.f32 %v1059_v3, %v3341_v8  ;;  %v1061_v44 = vmul.f32 %v1058_v1, %v3344_v47  ;;  %v1125_v39 = vmul.f32 0.22831132, %v3521_v40 }
 0x11f   : > { %v1126_v54 = vmul.f32 0.22831132, %v3523_v34  ;;  %v1143_v51 = vmul.f32 0.036502507, %v3521_v40  ;;  %v1069_v0 = vpop.permute.xlu0 %1068  ;;  %v1144_v31 = vmul.f32 0.036502507, %v3523_v34 }
 0x120   : > { %1122 = vst [vmem:[%s558_s16] sm:$0x77] %v1120_v30  ;;  %v1066_v4 = vadd.f32 %v3462_v28, %v1060_v43  ;;  %v1071_v42 = vpop.permute.xlu1 %1070  ;;  %v1167_v62 = vmul.f32 0.13315897, %v3521_v40  ;;  %v1168_v2 = vmul.f32 0.13315897, %v3523_v34  ;;  %v1067_v8 = vadd.f32 %v3465_v35, %v1061_v44 }
 0x121   : > { %v1072_v47 = vsel %vm882_vm3, %v1069_v0, %v1071_v42  ;;  %v1073_v26 = vsel %vm882_vm3, %v1071_v42, %v1069_v0  ;;  %v1141_v28 = vadd.f32 %v4114_v56, %v1125_v39  ;;  %v1142_v61 = vadd.f32 %v4115_v59, %v1126_v54 }
 0x122   : > { %v1074_v49 = vmul.f32 %v1072_v47, %v3379_v41  ;;  %v1075_v22 = vmul.f32 %v1073_v26, %v3382_v5  ;;  %v1147_v46 = vrot.slane %v1143_v51, 1  ;;  %v1148_v35 = vrot.slane %v1144_v31, 1 }
 0x123   : > { %v1171_v1 = vrot.slane %v1167_v62, 2  ;;  %v1172_v3 = vrot.slane %v1168_v2, 2  ;;  %v1289_v30 = vmul.f32 0.09392031, %v3521_v40  ;;  %v1079_v0 = vpop.permute.xlu0 %1078  ;;  %v1290_v39 = vmul.f32 0.09392031, %v3523_v34 }
 0x124   : > { %v1076_v43 = vadd.f32 %v1074_v49, %v1066_v4  ;;  %v1077_v44 = vadd.f32 %v1075_v22, %v1067_v8  ;;  %v1081_v42 = vpop.permute.xlu1 %1080  ;;  %v1151_v27 = vadd.f32 %v1147_v46, %v1141_v28  ;;  %v1152_v5 = vadd.f32 %v1148_v35, %v1142_v61 }
 0x125   : > { %v1082_v41 = vsel %vm912_vm4, %v1079_v0, %v1081_v42  ;;  %v1083_v11 = vsel %vm912_vm4, %v1081_v42, %v1079_v0  ;;  %v4116_v54 = vrot.slane %v2928_v16, %v2910_v10  ;;  %v4117_v62 = vrot.slane %v2925_v15, %v2919_v13 }
 0x126   : > { %v1084_v31 = vmul.f32 %v1082_v41, %v3405_v38  ;;  %v1085_v4 = vmul.f32 %v1083_v11, %v3408_v18  ;;  %v4118_v8 = vrot.slane %v2928_v16, %v2916_v12  ;;  %v4119_v26 = vrot.slane %v2925_v15, %v2922_v14 }
 0x127   : > { %v1305_v51 = vadd.f32 %v4116_v54, %v1289_v30  ;;  %v1165_v2 = vadd.f32 %v4117_v62, %v1151_v27  ;;  %v1307_v28 = vmul.f32 -0.25622872, %v3521_v40  ;;  %v1308_v49 = vmul.f32 -0.25622872, %v3523_v34  ;;  %v1089_v59 = vpop.permute.xlu0 %1088 }
 0x128   : > { %v1306_v47 = vadd.f32 %v4118_v8, %v1290_v39  ;;  %v1166_v56 = vadd.f32 %v4119_v26, %v1152_v5  ;;  %v1331_v38 = vmul.f32 -0.7658969, %v3521_v40  ;;  %v1086_v22 = vadd.f32 %v1084_v31, %v1076_v43  ;;  %v1091_v61 = vpop.permute.xlu1 %1090 }
 0x129   : > { %v1087_v18 = vadd.f32 %v1085_v4, %v1077_v44  ;;  %v1175_v46 = vadd.f32 %v1171_v1, %v1165_v2  ;;  %v1332_v27 = vmul.f32 -0.7658969, %v3523_v34  ;;  %v1092_v16 = vsel %vm942_vm5, %v1089_v59, %v1091_v61 }
 0x12a   : > { %v1093_v15 = vsel %vm942_vm5, %v1091_v61, %v1089_v59  ;;  %v1176_v35 = vadd.f32 %v1172_v3, %v1166_v56  ;;  %v1311_v30 = vrot.slane %v1307_v28, 1  ;;  %v1094_v0 = vmul.f32 %v1092_v16, %v3432_v29 }
 0x12b   : > { %v1095_v42 = vmul.f32 %v1093_v15, %v3435_v45  ;;  %v4120_v43 = vrot.slane %v2896_v7, %v2893_v6  ;;  %v1312_v39 = vrot.slane %v1308_v49, 1  ;;  %v4121_v1 = vrot.slane %v2896_v7, %v2907_v9  ;;  %v1099_v3 = vpop.permute.xlu0 %1098 }
 0x12c   : > { %v1315_v11 = vadd.f32 %v1311_v30, %v1305_v51  ;;  %v1335_v5 = vrot.slane %v1331_v38, 2  ;;  %v1336_v54 = vrot.slane %v1332_v27, 2  ;;  %v1096_v31 = vadd.f32 %v1094_v0, %v1086_v22  ;;  %v1101_v62 = vpop.permute.xlu1 %1100 }
 0x12d   : > { %v1189_v44 = vadd.f32 %v4120_v43, %v1175_v46  ;;  %v1190_v41 = vadd.f32 %v4121_v1, %v1176_v35  ;;  %v1097_v4 = vadd.f32 %v1095_v42, %v1087_v18  ;;  %v1316_v2 = vadd.f32 %v1312_v39, %v1306_v47 }
 0x12e   : > { %v1454_v29 = vmul.f32 0.6809264, %v3521_v40  ;;  %v1102_v45 = vsel %vm972_vm6, %v1099_v3, %v1101_v62  ;;  %v1103_v8 = vsel %vm972_vm6, %v1101_v62, %v1099_v3  ;;  %v4122_v7 = vrot.slane %v2936_v19, %v2919_v13 }
 0x12f   : > { %v1455_v51 = vmul.f32 0.6809264, %v3523_v34  ;;  %v1104_v56 = vmul.f32 %v1102_v45, %v3454_v55  ;;  %v1105_v28 = vmul.f32 %v1103_v8, %v3457_v60  ;;  %v4123_v47 = vrot.slane %v2936_v19, %v2922_v14  ;;  %v1109_v60 = vpop.permute.xlu0 %1108 }
 0x130   : > { %v1329_v26 = vadd.f32 %v4122_v7, %v1315_v11  ;;  %v4124_v38 = vrot.slane %v2939_v20, %v2910_v10  ;;  %v4125_v59 = vrot.slane %v2939_v20, %v2916_v12  ;;  %v1472_v46 = vmul.f32 -0.4363097, %v3521_v40  ;;  %v1111_v15 = vpop.permute.xlu1 %1110 }
 0x131   : > { %v1330_v49 = vadd.f32 %v4123_v47, %v1316_v2  ;;  %v1473_v27 = vmul.f32 -0.4363097, %v3523_v34  ;;  %v1106_v55 = vadd.f32 %v1104_v56, %v1096_v31  ;;  %v1107_v16 = vadd.f32 %v1105_v28, %v1097_v4 }
 0x132   : > { %v1470_v22 = vadd.f32 %v4124_v38, %v1454_v29  ;;  %v1339_v18 = vadd.f32 %v1335_v5, %v1329_v26  ;;  %v1471_v61 = vadd.f32 %v4125_v59, %v1455_v51  ;;  %v1496_v19 = vmul.f32 0.013727555, %v3521_v40 }
 0x133   : > { %v1340_v35 = vadd.f32 %v1336_v54, %v1330_v49  ;;  %v1112_v30 = vsel %vm1002_vm7, %v1109_v60, %v1111_v15  ;;  %v1113_v0 = vsel %vm1002_vm7, %v1111_v15, %v1109_v60  ;;  %v4126_v20 = vrot.slane %v2931_v17, %v2893_v6 }
 0x134   : > { %v1476_v43 = vrot.slane %v1472_v46, 1  ;;  %v1114_v39 = vmul.f32 %v1112_v30, %v3468_v36  ;;  %v1115_v1 = vmul.f32 %v1113_v0, %v3471_v25  ;;  %v4127_v11 = vrot.slane %v2931_v17, %v2907_v9 }
 0x135   : > { %v1353_v42 = vadd.f32 %v4126_v20, %v1339_v18  ;;  %v1477_v54 = vrot.slane %v1473_v27, 1  ;;  %v1497_v4 = vmul.f32 0.013727555, %v3523_v34  ;;  %v1500_v3 = vrot.slane %v1496_v19, 2 }
 0x136   : > { %v1354_v5 = vadd.f32 %v4127_v11, %v1340_v35  ;;  %v1480_v31 = vadd.f32 %v1476_v43, %v1470_v22  ;;  %v1619_v37 = vmul.f32 0.04648423, %v3521_v40  ;;  %v3630_v62 = vadd.f32 %v1114_v39, %v1106_v55 }
 0x137   : > { %v3632_v2 = vadd.f32 %v1115_v1, %v1107_v16  ;;  %v1481_v29 = vadd.f32 %v1477_v54, %v1471_v61  ;;  %v3635_v36 = vmul.f32 0.04648423, %v3523_v34  ;;  %v4128_v25 = vrot.slane %v2955_v23, %v2919_v13 }
 0x138   : > { %v1501_v45 = vrot.slane %v1497_v4, 2  ;;  %v4129_v8 = vrot.slane %v2958_v24, %v2910_v10  ;;  %v3646_v26 = vmul.f32 0.113448754, %v3521_v40  ;;  %v1191_v51 = vmul.f32 0.1001023, %v3630_v62 }
 0x139   : > { %v1494_v17 = vadd.f32 %v4128_v25, %v1480_v31  ;;  %v1192_v56 = vmul.f32 0.1001023, %v3632_v2  ;;  %v1209_v28 = vmul.f32 0.4482237, %v3630_v62  ;;  %v4130_v47 = vrot.slane %v2955_v23, %v2922_v14 }
 0x13a   : > { %v3643_v7 = vadd.f32 %v4129_v8, %v1619_v37  ;;  %v1210_v38 = vmul.f32 0.4482237, %v3632_v2  ;;  %v1233_v22 = vmul.f32 -0.06154748, %v3630_v62  ;;  %v1234_v18 = vmul.f32 -0.06154748, %v3632_v2 }
 0x13b   : > { %v1495_v49 = vadd.f32 %v4130_v47, %v1481_v29  ;;  %v1504_v59 = vadd.f32 %v1500_v3, %v1494_v17  ;;  %v1193_v61 = vadd.f32 %v1191_v51, %v1189_v44  ;;  %v1194_v46 = vadd.f32 %v1192_v56, %v1190_v41 }
 0x13c   : > { %v1213_v27 = vrot.slane %v1209_v28, 1  ;;  %v1355_v55 = vmul.f32 0.19608557, %v3630_v62  ;;  %v1214_v16 = vrot.slane %v1210_v38, 1  ;;  %v1237_v60 = vrot.slane %v1233_v22, 2 }
 0x13d   : > { %v1238_v15 = vrot.slane %v1234_v18, 2  ;;  %v1356_v35 = vmul.f32 0.19608557, %v3632_v2  ;;  %v4131_v23 = vrot.slane %v3044_v63, %v2910_v10  ;;  %v4132_v30 = vrot.slane %v3044_v63, %v2916_v12 }
 0x13e   : > { %v1357_v20 = vadd.f32 %v1355_v55, %v1353_v42  ;;  %v1373_v44 = vmul.f32 0.25933087, %v3630_v62  ;;  %v1374_v43 = vmul.f32 0.25933087, %v3632_v2  ;;  %v1397_v39 = vmul.f32 -0.2226495, %v3630_v62 }
 0x13f   : > { %v1207_v19 = vadd.f32 %v4131_v23, %v1193_v61  ;;  %v1208_v0 = vadd.f32 %v4132_v30, %v1194_v46  ;;  %v1358_v41 = vadd.f32 %v1356_v35, %v1354_v5  ;;  %v1398_v1 = vmul.f32 -0.2226495, %v3632_v2 }
 0x140   : > { %v4133_v31 = vrot.slane %v3055_v48, %v2910_v10  ;;  %v1377_v3 = vrot.slane %v1373_v44, 1  ;;  %v4134_v63 = vrot.slane %v3055_v48, %v2916_v12  ;;  %v1378_v37 = vrot.slane %v1374_v43, 1 }
 0x141   : > { %v1217_v11 = vadd.f32 %v1213_v27, %v1207_v19  ;;  %v1218_v54 = vadd.f32 %v1214_v16, %v1208_v0  ;;  %v1401_v29 = vrot.slane %v1397_v39, 2  ;;  %v1402_v5 = vrot.slane %v1398_v1, 2 }
 0x142   : > { %v1371_v4 = vadd.f32 %v4133_v31, %v1357_v20  ;;  %v1372_v42 = vadd.f32 %v4134_v63, %v1358_v41  ;;  %v4135_v25 = vrot.slane %v3049_v32, %v2919_v13  ;;  %v4136_v8 = vrot.slane %v3049_v32, %v2922_v14 }
 0x143   : > { %v1505_v28 = vadd.f32 %v1501_v45, %v1495_v49  ;;  %v4137_v38 = vrot.slane %v2942_v21, %v2893_v6  ;;  %v1520_v48 = vmul.f32 -0.056155156, %v3630_v62  ;;  %v1521_v18 = vmul.f32 -0.056155156, %v3632_v2 }
 0x144   : > { %v1231_v17 = vadd.f32 %v4135_v25, %v1217_v11  ;;  %v1232_v51 = vadd.f32 %v4136_v8, %v1218_v54  ;;  %v1381_v56 = vadd.f32 %v1377_v3, %v1371_v4  ;;  %v1382_v47 = vadd.f32 %v1378_v37, %v1372_v42 }
 0x145   : > { %v1518_v22 = vadd.f32 %v4137_v38, %v1504_v59  ;;  %v4138_v27 = vrot.slane %v3058_v50, %v2919_v13  ;;  %v4139_v32 = vrot.slane %v2942_v21, %v2907_v9  ;;  %v4140_v45 = vrot.slane %v3058_v50, %v2922_v14 }
 0x146   : > { %v1241_v61 = vadd.f32 %v1237_v60, %v1231_v17  ;;  %v1242_v46 = vadd.f32 %v1238_v15, %v1232_v51  ;;  %v1538_v59 = vmul.f32 0.45983377, %v3630_v62  ;;  %v1539_v23 = vmul.f32 0.45983377, %v3632_v2 }
 0x147   : > { %v1395_v55 = vadd.f32 %v4138_v27, %v1381_v56  ;;  %v1519_v16 = vadd.f32 %v4139_v32, %v1505_v28  ;;  %v1396_v49 = vadd.f32 %v4140_v45, %v1382_v47  ;;  %v1522_v35 = vadd.f32 %v1520_v48, %v1518_v22 }
 0x148   : > { %v4141_v60 = vrot.slane %v3052_v33, %v2893_v6  ;;  %v4142_v19 = vrot.slane %v3052_v33, %v2907_v9  ;;  %v4143_v50 = vrot.slane %v3064_v53, %v2910_v10  ;;  %v1542_v41 = vrot.slane %v1538_v59, 1 }
 0x149   : > { %v1405_v0 = vadd.f32 %v1401_v29, %v1395_v55  ;;  %v1523_v21 = vadd.f32 %v1521_v18, %v1519_v16  ;;  %v1406_v20 = vadd.f32 %v1402_v5, %v1396_v49  ;;  %v1543_v43 = vrot.slane %v1539_v23, 1 }
 0x14a   : > { %v1255_v15 = vadd.f32 %v4141_v60, %v1241_v61  ;;  %v1256_v30 = vadd.f32 %v4142_v19, %v1242_v46  ;;  %v1536_v44 = vadd.f32 %v4143_v50, %v1522_v35  ;;  %v4144_v11 = vrot.slane %v3061_v52, %v2893_v6 }
 0x14b   : > { %v4145_v31 = vrot.slane %v3064_v53, %v2916_v12  ;;  %v4146_v4 = vrot.slane %v3061_v52, %v2907_v9  ;;  %v1562_v42 = vmul.f32 0.44080764, %v3630_v62  ;;  %v1563_v37 = vmul.f32 0.44080764, %v3632_v2 }
 0x14c   : > { %v1257_v39 = vsub.f32 0.0, %v1255_v15  ;;  %v1258_v1 = vsub.f32 0.0, %v1256_v30  ;;  %v1419_v54 = vadd.f32 %v4144_v11, %v1405_v0  ;;  %v1546_v63 = vadd.f32 %v1542_v41, %v1536_v44  ;;  %v4152_v0 = vld [vmem:[#allocation4_spill] sm:$0xff] }
 0x14d   : > { %v1537_v33 = vadd.f32 %v4145_v31, %v1523_v21  ;;  %v1420_v3 = vadd.f32 %v4146_v4, %v1406_v20  ;;  %v4147_v51 = vrot.slane %v3069_v57, %v2919_v13  ;;  %v1566_v53 = vrot.slane %v1562_v42, 2  ;;  %v4155_v42 = vld [vmem:[#allocation3_spill] sm:$0xff] }
 0x14e   : > { %v1259_v29 = vmul.f32 1.442695, %v1257_v39  ;;  %v1261_v5 = vmul.f32 1.442695, %v1258_v1  ;;  %v1421_v25 = vsub.f32 0.0, %v1419_v54  ;;  %v1567_v28 = vrot.slane %v1563_v37, 2 }
 0x14f   : > { %v1547_v17 = vadd.f32 %v1543_v43, %v1537_v33  ;;  %v1422_v8 = vsub.f32 0.0, %v1420_v3  ;;  %v1560_v56 = vadd.f32 %v4147_v51, %v1546_v63  ;;  %v4148_v52 = vrot.slane %v3069_v57, %v2922_v14 }
 0x150   : > { %2732 = vpow2.f32 %v1259_v29  ;;  %v1423_v47 = vmul.f32 1.442695, %v1421_v25  ;;  %v4149_v22 = vrot.slane %v2958_v24, %v2916_v12  ;;  %v1638_v46 = vmul.f32 0.113448754, %v3523_v34 }
 0x151   : > { %v1561_v38 = vadd.f32 %v4148_v52, %v1547_v17  ;;  %2734 = vpow2.f32 %v1261_v5  ;;  %v1425_v18 = vmul.f32 1.442695, %v1422_v8  ;;  %v1570_v61 = vadd.f32 %v1566_v53, %v1560_v56 }
 0x152   : > { %v1636_v48 = vadd.f32 %v4149_v22, %v3635_v36  ;;  %2736 = vpow2.f32 %v1423_v47  ;;  %v1641_v55 = vrot.slane %v3646_v26, 1  ;;  %v1661_v32 = vmul.f32 -0.26633573, %v3521_v40  ;;  %v4158_v22 = vld [vmem:[#allocation5_spill] sm:$0xff] }
 0x153   : > { %v1571_v27 = vadd.f32 %v1567_v28, %v1561_v38  ;;  %2738 = vpow2.f32 %v1425_v18  ;;  %v4150_v57 = vrot.slane %v3072_v58, %v2893_v6  ;;  %v1642_v45 = vrot.slane %v1638_v46, 1 }
 0x154   : > { %v1662_v24 = vmul.f32 -0.26633573, %v3523_v34  ;;  %v4151_v36 = vrot.slane %v3072_v58, %v2907_v9  ;;  %v1645_v35 = vadd.f32 %v1641_v55, %v3643_v7  ;;  %v1665_v59 = vrot.slane %v1661_v32, 2 }
 0x155   : > { %v1584_v16 = vadd.f32 %v4150_v57, %v1570_v61  ;;  %v1685_v23 = vmul.f32 -0.59423894, %v3630_v62  ;;  %v1646_v60 = vadd.f32 %v1642_v45, %v1636_v48  ;;  %v1686_v19 = vmul.f32 -0.59423894, %v3632_v2  ;;  %v4161_v45 = vld [vmem:[#allocation12_spill] sm:$0xff] }
 0x156   : > { %v1585_v49 = vadd.f32 %v4151_v36, %v1571_v27  ;;  %v1666_v15 = vrot.slane %v1662_v24, 2  ;;  %v4153_v21 = vrot.slane %v4152_v0, %v2919_v13  ;;  %v1703_v50 = vmul.f32 -0.10437364, %v3630_v62 }
 0x157   : > { %v1586_v26 = vsub.f32 0.0, %v1584_v16  ;;  %v1704_v58 = vmul.f32 -0.10437364, %v3632_v2  ;;  %v4154_v7 = vrot.slane %v4152_v0, %v2922_v14  ;;  %v1727_v43 = vmul.f32 0.04690469, %v3630_v62  ;;  %v4164_v0 = vld [vmem:[#allocation8_spill] sm:$0xff] }
 0x158   : > { %v1587_v30 = vsub.f32 0.0, %v1585_v49  ;;  %v1659_v20 = vadd.f32 %v4153_v21, %v1645_v35  ;;  %v1728_v39 = vmul.f32 0.04690469, %v3632_v2  ;;  %v1707_v54 = vrot.slane %v1703_v50, 1 }
 0x159   : > { %v1588_v44 = vmul.f32 1.442695, %v1586_v26  ;;  %v1660_v41 = vadd.f32 %v4154_v7, %v1646_v60  ;;  %v1708_v31 = vrot.slane %v1704_v58, 1  ;;  %v1731_v4 = vrot.slane %v1727_v43, 2 }
 0x15a   : > { %v1590_v1 = vmul.f32 1.442695, %v1587_v30  ;;  %v1669_v11 = vadd.f32 %v1665_v59, %v1659_v20  ;;  %v1732_v3 = vrot.slane %v1728_v39, 2  ;;  %v2733_v63 = vpop.eup %2732  ;;  %v4156_v37 = vrot.slane %v4155_v42, %v2893_v6 }
 0x15b   : > { %2740 = vpow2.f32 %v1588_v44  ;;  %v1670_v33 = vadd.f32 %v1666_v15, %v1660_v41  ;;  %v1784_v5 = vmul.f32 0.3690872, %v3521_v40  ;;  %v1785_v25 = vmul.f32 0.3690872, %v3523_v34  ;;  %v2735_v17 = vpop.eup %2734  ;;  %v4166_v44 = vld [vmem:[#allocation13_spill] sm:$0xff] }
 0x15c   : > { %2742 = vpow2.f32 %v1590_v1  ;;  %v1683_v29 = vadd.f32 %v4156_v37, %v1669_v11  ;;  %v1263_v8 = vadd.f32 1.0, %v2733_v63  ;;  %v4157_v51 = vrot.slane %v4155_v42, %v2907_v9  ;;  %v2737_v47 = vpop.eup %2736 }
 0x15d   : > { %v1802_v53 = vmul.f32 0.36071396, %v3521_v40  ;;  %v1803_v28 = vmul.f32 0.36071396, %v3523_v34  ;;  %v1264_v52 = vadd.f32 1.0, %v2735_v17  ;;  %v4159_v48 = vrot.slane %v4158_v22, %v2910_v10  ;;  %v2739_v27 = vpop.eup %2738 }
 0x15e   : > { %v1684_v56 = vadd.f32 %v4157_v51, %v1670_v33  ;;  %v1687_v38 = vadd.f32 %v1685_v23, %v1683_v29  ;;  %v4160_v61 = vrot.slane %v4158_v22, %v2916_v12  ;;  %2744 = vrcp.f32 %v1263_v8 }
 0x15f   : > { %v1800_v18 = vadd.f32 %v4159_v48, %v1784_v5  ;;  %v1427_v55 = vadd.f32 1.0, %v2737_v47  ;;  %v1806_v57 = vrot.slane %v1802_v53, 1  ;;  %2746 = vrcp.f32 %v1264_v52  ;;  %v4170_v53 = vld [vmem:[#allocation6_spill] sm:$0xff] }
 0x160   : > { %v1801_v46 = vadd.f32 %v4160_v61, %v1785_v25  ;;  %v1688_v32 = vadd.f32 %v1686_v19, %v1684_v56  ;;  %v1428_v16 = vadd.f32 1.0, %v2739_v27  ;;  %v4162_v24 = vrot.slane %v4161_v45, %v2910_v10 }
 0x161   : > { %v1807_v49 = vrot.slane %v1803_v28, 1  ;;  %2748 = vrcp.f32 %v1427_v55  ;;  %v4163_v35 = vrot.slane %v4161_v45, %v2916_v12  ;;  %v1810_v23 = vadd.f32 %v1806_v57, %v1800_v18 }
 0x162   : > { %v1701_v36 = vadd.f32 %v4162_v24, %v1687_v38  ;;  %v1826_v26 = vmul.f32 -0.11619805, %v3521_v40  ;;  %2750 = vrcp.f32 %v1428_v16  ;;  %v1827_v19 = vmul.f32 -0.11619805, %v3523_v34  ;;  %v4172_v38 = vld [vmem:[#allocation14_spill] sm:$0xff] }
 0x163   : > { %v1702_v59 = vadd.f32 %v4163_v35, %v1688_v32  ;;  %v1811_v15 = vadd.f32 %v1807_v49, %v1801_v46  ;;  %v4165_v21 = vrot.slane %v4164_v0, %v2919_v13  ;;  %v1850_v58 = vmul.f32 -0.09069083, %v3630_v62 }
 0x164   : > { %v1711_v60 = vadd.f32 %v1707_v54, %v1701_v36  ;;  %v1830_v50 = vrot.slane %v1826_v26, 2  ;;  %v4167_v7 = vrot.slane %v4166_v44, %v2919_v13  ;;  %v4168_v43 = vrot.slane %v4164_v0, %v2922_v14 }
 0x165   : > { %v1712_v30 = vadd.f32 %v1708_v31, %v1702_v59  ;;  %v1824_v20 = vadd.f32 %v4165_v21, %v1810_v23  ;;  %v1831_v1 = vrot.slane %v1827_v19, 2  ;;  %v1851_v11 = vmul.f32 -0.09069083, %v3632_v2  ;;  %v2741_v54 = vpop.eup %2740  ;;  %v4176_v23 = vld [vmem:[#allocation17_spill] sm:$0xff] }
 0x166   : > { %v1725_v41 = vadd.f32 %v4167_v7, %v1711_v60  ;;  %v1825_v39 = vadd.f32 %v4168_v43, %v1811_v15  ;;  %v4169_v31 = vrot.slane %v4166_v44, %v2922_v14  ;;  %v1868_v42 = vmul.f32 -0.3145659, %v3630_v62  ;;  %v2743_v29 = vpop.eup %2742  ;;  %v4181_v7 = vld [vmem:[#allocation21_spill] sm:$0xff] }
 0x167   : > { %v1834_v63 = vadd.f32 %v1830_v50, %v1824_v20  ;;  %v1869_v37 = vmul.f32 -0.3145659, %v3632_v2  ;;  %v1592_v5 = vadd.f32 1.0, %v2741_v54  ;;  %v1892_v8 = vmul.f32 -0.4260054, %v3630_v62  ;;  %v4179_v50 = vld [vmem:[#allocation9_spill] sm:$0xff] }
 0x168   : > { %v1726_v33 = vadd.f32 %v4169_v31, %v1712_v30  ;;  %v1735_v25 = vadd.f32 %v1731_v4, %v1725_v41  ;;  %v1835_v17 = vadd.f32 %v1831_v1, %v1825_v39  ;;  %v1593_v51 = vadd.f32 1.0, %v2743_v29  ;;  %v3800_v46 = vpop.eup %2744 }
 0x169   : > { %v4171_v28 = vrot.slane %v4170_v53, %v2893_v6  ;;  %v1872_v52 = vrot.slane %v1868_v42, 1  ;;  %2752 = vrcp.f32 %v1592_v5  ;;  %v4173_v22 = vrot.slane %v4172_v38, %v2893_v6  ;;  %v3806_v57 = vpop.eup %2746 }
 0x16a   : > { %v1736_v56 = vadd.f32 %v1732_v3, %v1726_v33  ;;  %v4174_v18 = vrot.slane %v4170_v53, %v2907_v9  ;;  %v1873_v61 = vrot.slane %v1869_v37, 1  ;;  %2754 = vrcp.f32 %v1593_v51  ;;  %v4183_v37 = vld [vmem:[#allocation18_spill] sm:$0xff] }
 0x16b   : > { %v1848_v47 = vadd.f32 %v4171_v28, %v1834_v63  ;;  %v1749_v48 = vadd.f32 %v4173_v22, %v1735_v25  ;;  %v4175_v3 = vrot.slane %v4172_v38, %v2907_v9  ;;  %v1893_v32 = vmul.f32 -0.4260054, %v3632_v2  ;;  %v3809_v49 = vpop.eup %2748 }
 0x16c   : > { %v1849_v4 = vadd.f32 %v4174_v18, %v1835_v17  ;;  %v1896_v24 = vrot.slane %v1892_v8, 2  ;;  %v1949_v36 = vmul.f32 -0.51188105, %v3521_v40  ;;  %v1271_v35 = vcombine.low %v3800_v46, %v3806_v57  ;;  %v3817_v19 = vpop.eup %2750 }
 0x16d   : > { %v1750_v27 = vadd.f32 %v4175_v3, %v1736_v56  ;;  %v1852_v55 = vadd.f32 %v1850_v58, %v1848_v47  ;;  %v1751_v16 = vsub.f32 0.0, %v1749_v48  ;;  %v4177_v26 = vrot.slane %v4176_v23, %v2910_v10 }
 0x16e   : > { %v1853_v45 = vadd.f32 %v1851_v11, %v1849_v4  ;;  %v1897_v15 = vrot.slane %v1893_v32, 2  ;;  %v4178_v0 = vrot.slane %v4176_v23, %v2916_v12  ;;  %v1950_v20 = vmul.f32 -0.51188105, %v3523_v34 }
 0x16f   : > { %v1752_v59 = vsub.f32 0.0, %v1750_v27  ;;  %v1866_v60 = vadd.f32 %v4177_v26, %v1852_v55  ;;  %v1753_v30 = vmul.f32 1.442695, %v1751_v16  ;;  %v4180_v58 = vrot.slane %v4179_v50, %v2910_v10  ;;  %v4187_v27 = vld [vmem:[#allocation15_spill] sm:$0xff] }
 0x170   : > { %v1867_v21 = vadd.f32 %v4178_v0, %v1853_v45  ;;  %v1278_v41 = vrot.slane %v1271_v35, %v4181_v7  ;;  %v1435_v43 = vcombine.low %v3809_v49, %v3817_v19  ;;  %v4182_v54 = vrot.slane %v4179_v50, %v2916_v12  ;;  %v4190_v26 = vld [vmem:[#allocation11_spill] sm:$0xff] }
 0x171   : > { %v1965_v44 = vadd.f32 %v4180_v58, %v1949_v36  ;;  %v1755_v39 = vmul.f32 1.442695, %v1752_v59  ;;  %v1876_v1 = vadd.f32 %v1872_v52, %v1866_v60  ;;  %2756 = vpow2.f32 %v1753_v30 }
 0x172   : > { %v1877_v11 = vadd.f32 %v1873_v61, %v1867_v21  ;;  %v1966_v31 = vadd.f32 %v4182_v54, %v1950_v20  ;;  %v1967_v33 = vmul.f32 0.5852326, %v3521_v40  ;;  %v1285_v63 = vrot.slane %v1278_v41, %v4181_v7 }
 0x173   : > { %v1442_v42 = vrot.slane %v1435_v43, %v4181_v7  ;;  %2758 = vpow2.f32 %v1755_v39  ;;  %v4184_v29 = vrot.slane %v4183_v37, %v2919_v13  ;;  %v4185_v25 = vrot.slane %v4183_v37, %v2922_v14  ;;  %v3854_v22 = vpop.eup %2752  ;;  %v4193_v37 = vld [vmem:[#allocation7_spill] sm:$0xff] }
 0x174   : > { %v1968_v8 = vmul.f32 0.5852326, %v3523_v34  ;;  %v1971_v51 = vrot.slane %v1967_v33, 1  ;;  %v1991_v56 = vmul.f32 -0.15289566, %v3521_v40  ;;  %v2133_v53 = vrot.slane %v3521_v40, 1  ;;  %v3857_v3 = vpop.eup %2754 }
 0x175   : > { %v1890_v5 = vadd.f32 %v4184_v29, %v1876_v1  ;;  %v1891_v17 = vadd.f32 %v4185_v25, %v1877_v11  ;;  %1287 = vst.msk [vmem:[%s3832_s19] ss:$8 sm:$0x3] %vm3287_vm0, %v1285_v63  ;;  %v1449_v47 = vrot.slane %v1442_v42, %v4181_v7  ;;  %v1992_v38 = vmul.f32 -0.15289566, %v3523_v34 }
 0x176   : > { %v1972_v18 = vrot.slane %v1968_v8, 1  ;;  %v1975_v4 = vadd.f32 %v1971_v51, %v1965_v44  ;;  %v2015_v61 = vmul.f32 -0.1314223, %v3630_v62  ;;  %v4188_v55 = vrot.slane %v4187_v27, %v2893_v6 }
 0x177   : > { %v1900_v52 = vadd.f32 %v1896_v24, %v1890_v5  ;;  %v1901_v48 = vadd.f32 %v1897_v15, %v1891_v17  ;;  %2680 = vst.msk [vmem:[%s3832_s19 + $0x1] ss:$8 sm:$0x3] %vm3287_vm0, %v1449_v47  ;;  %v1995_v16 = vrot.slane %v1991_v56, 2  ;;  %v2016_v45 = vmul.f32 -0.1314223, %v3632_v2 }
 0x178   : > { %v2033_v24 = vmul.f32 -0.3758386, %v3630_v62  ;;  %v1600_v36 = vcombine.low %v3854_v22, %v3857_v3  ;;  %v4189_v35 = vrot.slane %v4187_v27, %v2907_v9  ;;  %v1976_v23 = vadd.f32 %v1972_v18, %v1966_v31 }
 0x179   : > { %v1914_v32 = vadd.f32 %v4188_v55, %v1900_v52  ;;  %v4191_v60 = vrot.slane %v4190_v26, %v2919_v13  ;;  %v1996_v0 = vrot.slane %v1992_v38, 2  ;;  %v2034_v21 = vmul.f32 -0.3758386, %v3632_v2  ;;  %v4196_v55 = vld [vmem:[#allocation19_spill] sm:$0xff] }
 0x17a   : > { %v1915_v59 = vadd.f32 %v4189_v35, %v1901_v48  ;;  %v2057_v20 = vmul.f32 0.2332471, %v3630_v62  ;;  %v1607_v50 = vrot.slane %v1600_v36, %v4181_v7  ;;  %v4192_v44 = vrot.slane %v4190_v26, %v2922_v14  ;;  %v4198_v35 = vld [vmem:[#allocation2_spill] sm:$0xff] }
 0x17b   : > { %v1989_v15 = vadd.f32 %v4191_v60, %v1975_v4  ;;  %v1916_v30 = vsub.f32 0.0, %v1914_v32  ;;  %v2134_v39 = vrot.slane %v3523_v34, 1  ;;  %v2037_v11 = vrot.slane %v2033_v24, 1  ;;  %v2757_v31 = vpop.eup %2756 }
 0x17c   : > { %v1917_v58 = vsub.f32 0.0, %v1915_v59  ;;  %v1990_v41 = vadd.f32 %v4192_v44, %v1976_v23  ;;  %v2058_v54 = vmul.f32 0.2332471, %v3632_v2  ;;  %v1614_v33 = vrot.slane %v1607_v50, %v4181_v7 }
 0x17d   : > { %v1999_v43 = vadd.f32 %v1995_v16, %v1989_v15  ;;  %v1918_v1 = vmul.f32 1.442695, %v1916_v30  ;;  %v4194_v29 = vrot.slane %v4193_v37, %v2893_v6  ;;  %v2759_v25 = vpop.eup %2758  ;;  %v1757_v17 = vadd.f32 1.0, %v2757_v31 }
 0x17e   : > { %v1920_v63 = vmul.f32 1.442695, %v1917_v58  ;;  %v2000_v42 = vadd.f32 %v1996_v0, %v1990_v41  ;;  %v2038_v8 = vrot.slane %v2034_v21, 1  ;;  %v2061_v51 = vrot.slane %v2057_v20, 2  ;;  %v4203_v41 = vld [vmem:[#allocation20_spill] sm:$0xff] }
 0x17f   : > { %v2013_v5 = vadd.f32 %v4194_v29, %v1999_v43  ;;  %2760 = vpow2.f32 %v1918_v1  ;;  %2681 = vst.msk [vmem:[%s3832_s19 + $0x2] ss:$8 sm:$0x3] %vm3287_vm0, %v1614_v33  ;;  %v1758_v56 = vadd.f32 1.0, %v2759_v25  ;;  %v4195_v47 = vrot.slane %v4193_v37, %v2907_v9 }
 0x180   : > { %2762 = vpow2.f32 %v1920_v63  ;;  %v2062_v48 = vrot.slane %v2058_v54, 2  ;;  %v2116_v18 = vsub.f32 1.0, %v3800_v46  ;;  %v2117_v4 = vsub.f32 1.0, %v3806_v57 }
 0x181   : > { %v2014_v52 = vadd.f32 %v4195_v47, %v2000_v42  ;;  %v2017_v38 = vadd.f32 %v2015_v61, %v2013_v5  ;;  %2764 = vrcp.f32 %v1757_v17  ;;  %v4197_v32 = vrot.slane %v4196_v55, %v2910_v10 }
 0x182   : > { %2766 = vrcp.f32 %v1758_v56  ;;  %v2114_v24 = vmul.f32 %v3800_v46, %v3521_v40  ;;  %v2115_v36 = vmul.f32 %v3806_v57, %v3523_v34  ;;  %v4199_v61 = vrot.slane %v4198_v35, %v2910_v10 }
 0x183   : > { %v2018_v27 = vadd.f32 %v2016_v45, %v2014_v52  ;;  %v2031_v16 = vadd.f32 %v4197_v32, %v2017_v38  ;;  %v4200_v23 = vrot.slane %v4198_v35, %v2916_v12  ;;  %v2139_v45 = vsub.f32 1.0, %v3809_v49  ;;  %v4209_v38 = vld [vmem:[#allocation16_spill] sm:$0xff] }
 0x184   : > { %v2129_v59 = vmul.f32 %v4199_v61, %v2116_v18  ;;  %v4201_v60 = vrot.slane %v4196_v55, %v2916_v12  ;;  %v2137_v46 = vmul.f32 %v3809_v49, %v2133_v53  ;;  %v2140_v0 = vsub.f32 1.0, %v3817_v19 }
 0x185   : > { %v2130_v26 = vmul.f32 %v4200_v23, %v2117_v4  ;;  %v2041_v30 = vadd.f32 %v2037_v11, %v2031_v16  ;;  %v2138_v20 = vmul.f32 %v3817_v19, %v2134_v39  ;;  %v4202_v50 = vrot.slane %v4198_v35, %v2919_v13 }
 0x186   : > { %v2032_v15 = vadd.f32 %v4201_v60, %v2018_v27  ;;  %v3914_v57 = vadd.f32 %v2129_v59, %v2114_v24  ;;  %v4204_v43 = vrot.slane %v4203_v41, %v2919_v13  ;;  %v4205_v49 = vrot.slane %v4198_v35, %v2922_v14 }
 0x187   : > { %v3916_v21 = vadd.f32 %v2130_v26, %v2115_v36  ;;  %v2151_v58 = vmul.f32 %v4202_v50, %v2139_v45  ;;  %v2155_v11 = vrot.slane %v3521_v40, 2  ;;  %v2156_v31 = vrot.slane %v3523_v34, 2 }
 0x188   : > { %v2042_v44 = vadd.f32 %v2038_v8, %v2032_v15  ;;  %v2055_v1 = vadd.f32 %v4204_v43, %v2041_v30  ;;  %v2152_v53 = vmul.f32 %v4205_v49, %v2140_v0  ;;  %v2161_v19 = vsub.f32 1.0, %v3854_v22  ;;  %v4212_v0 = vld [vmem:[#allocation10_spill] sm:$0xff] }
 0x189   : > { %v3929_v54 = vadd.f32 %v2151_v58, %v2137_v46  ;;  %v2162_v39 = vsub.f32 1.0, %v3857_v3  ;;  %v4206_v33 = vrot.slane %v4203_v41, %v2922_v14  ;;  %v2159_v29 = vmul.f32 %v3854_v22, %v2155_v11  ;;  %v2761_v5 = vpop.eup %2760 }
 0x18a   : > { %v2065_v42 = vadd.f32 %v2061_v51, %v2055_v1  ;;  %v3937_v37 = vadd.f32 %v2152_v53, %v2138_v20  ;;  %v2160_v40 = vmul.f32 %v3857_v3, %v2156_v31  ;;  %v4207_v25 = vrot.slane %v4198_v35, %v2893_v6  ;;  %v2763_v47 = vpop.eup %2762 }
 0x18b   : > { %v2056_v63 = vadd.f32 %v4206_v33, %v2042_v44  ;;  %v4208_v17 = vrot.slane %v4198_v35, %v2907_v9  ;;  %v2198_v56 = vrot.slane %v3630_v62, 1  ;;  %v1922_v52 = vadd.f32 1.0, %v2761_v5  ;;  %v2765_v3 = vpop.eup %2764 }
 0x18c   : > { %v2173_v34 = vmul.f32 %v4207_v25, %v2161_v19  ;;  %v4210_v18 = vrot.slane %v4209_v38, %v2893_v6  ;;  %v2199_v4 = vrot.slane %v3632_v2, 1  ;;  %v1923_v27 = vadd.f32 1.0, %v2763_v47  ;;  %v2767_v24 = vpop.eup %2766 }
 0x18d   : > { %v2174_v8 = vmul.f32 %v4208_v17, %v2162_v39  ;;  %v2066_v51 = vadd.f32 %v2062_v48, %v2056_v63  ;;  %v2242_v16 = vmul.f32 0.44647565, %v3914_v57  ;;  %2768 = vrcp.f32 %v1922_v52 }
 0x18e   : > { %v2079_v22 = vadd.f32 %v4210_v18, %v2065_v42  ;;  %v3952_v55 = vadd.f32 %v2173_v34, %v2159_v29  ;;  %v4211_v36 = vrot.slane %v4209_v38, %v2907_v9  ;;  %v2177_v61 = vmul.f32 %v2765_v3, %v3630_v62 }
 0x18f   : > { %v3954_v32 = vadd.f32 %v2174_v8, %v2160_v40  ;;  %v1765_v59 = vcombine.low %v2765_v3, %v2767_v24  ;;  %2770 = vrcp.f32 %v1923_v27  ;;  %v2178_v23 = vmul.f32 %v2767_v24, %v3632_v2 }
 0x190   : > { %v2080_v48 = vadd.f32 %v4211_v36, %v2066_v51  ;;  %v2081_v35 = vsub.f32 0.0, %v2079_v22  ;;  %v2179_v26 = vsub.f32 1.0, %v2765_v3  ;;  %v2180_v15 = vsub.f32 1.0, %v2767_v24 }
 0x191   : > { %v2243_v30 = vmul.f32 0.44647565, %v3916_v21  ;;  %v1772_v46 = vrot.slane %v1765_v59, %v4181_v7  ;;  %v4213_v20 = vrot.slane %v4212_v0, %v2910_v10  ;;  %v2246_v58 = vmul.f32 0.5687668, %v3929_v54 }
 0x192   : > { %v2082_v45 = vsub.f32 0.0, %v2080_v48  ;;  %v2083_v60 = vmul.f32 1.442695, %v2081_v35  ;;  %v2247_v44 = vmul.f32 0.5687668, %v3937_v37  ;;  %v4214_v43 = vrot.slane %v4212_v0, %v2916_v12 }
 0x193   : > { %v2192_v50 = vmul.f32 %v4213_v20, %v2179_v26  ;;  %v2250_v49 = vmul.f32 0.35363388, %v3952_v55  ;;  %v1779_v53 = vrot.slane %v1772_v46, %v4181_v7  ;;  %v2248_v31 = vadd.f32 %v2246_v58, %v2242_v16 }
 0x194   : > { %2772 = vpow2.f32 %v2083_v60  ;;  %v2085_v41 = vmul.f32 1.442695, %v2082_v45  ;;  %v2193_v1 = vmul.f32 %v4214_v43, %v2180_v15  ;;  %v2249_v19 = vadd.f32 %v2247_v44, %v2243_v30 }
 0x195   : > { %v2194_v11 = vadd.f32 %v2192_v50, %v2177_v61  ;;  %v2251_v39 = vmul.f32 0.35363388, %v3954_v32  ;;  %v2285_v33 = vmul.f32 -0.12095308, %v3914_v57  ;;  %v2252_v63 = vadd.f32 %v2250_v49, %v2248_v31 }
 0x196   : > { %2774 = vpow2.f32 %v2085_v41  ;;  %v2195_v10 = vadd.f32 %v2193_v1, %v2178_v23  ;;  %2682 = vst.msk [vmem:[%s3832_s19 + $0x3] ss:$8 sm:$0x3] %vm3287_vm0, %v1779_v53  ;;  %v2286_v12 = vmul.f32 -0.12095308, %v3916_v21  ;;  %v4215_v26 = vrot.slane %v4212_v0, %v2919_v13 }
 0x197   : > { %v2254_v42 = vmul.f32 -0.053977452, %v2194_v11  ;;  %v2289_v29 = vmul.f32 0.36673352, %v3929_v54  ;;  %v2253_v5 = vadd.f32 %v2251_v39, %v2249_v19  ;;  %v2290_v25 = vmul.f32 0.36673352, %v3937_v37  ;;  %v2769_v51 = vpop.eup %2768 }
 0x198   : > { %v2255_v40 = vmul.f32 -0.053977452, %v2195_v10  ;;  %v2293_v34 = vmul.f32 0.062482495, %v3952_v55  ;;  %v2294_v47 = vmul.f32 0.062482495, %v3954_v32  ;;  %v2202_v16 = vmul.f32 %v2769_v51, %v2198_v56 }
 0x199   : > { %v2256_v17 = vadd.f32 %v2254_v42, %v2252_v63  ;;  %v2291_v8 = vadd.f32 %v2289_v29, %v2285_v33  ;;  %v2297_v52 = vmul.f32 0.2929917, %v2194_v11  ;;  %v2292_v18 = vadd.f32 %v2290_v25, %v2286_v12  ;;  %v2771_v27 = vpop.eup %2770 }
 0x19a   : > { %v2257_v38 = vadd.f32 %v2255_v40, %v2253_v5  ;;  %v2298_v22 = vmul.f32 0.2929917, %v2195_v10  ;;  %v2329_v3 = vmul.f32 0.0031500063, %v3914_v57  ;;  %v2204_v24 = vsub.f32 1.0, %v2769_v51 }
 0x19b   : > { %v2295_v36 = vadd.f32 %v2293_v34, %v2291_v8  ;;  %v2330_v48 = vmul.f32 0.0031500063, %v3916_v21  ;;  %v1930_v35 = vcombine.low %v2769_v51, %v2771_v27  ;;  %v2203_v61 = vmul.f32 %v2771_v27, %v2199_v4 }
 0x19c   : > { %v2205_v59 = vsub.f32 1.0, %v2771_v27  ;;  %v2296_v23 = vadd.f32 %v2294_v47, %v2292_v18  ;;  %v2216_v45 = vmul.f32 %v4215_v26, %v2204_v24  ;;  %v2333_v15 = vmul.f32 0.5357612, %v3929_v54 }
 0x19d   : > { %v2299_v60 = vadd.f32 %v2297_v52, %v2295_v36  ;;  %v2334_v30 = vmul.f32 0.5357612, %v3937_v37  ;;  %v1937_v56 = vrot.slane %v1930_v35, %v4181_v7  ;;  %v4216_v46 = vrot.slane %v4212_v0, %v2922_v14 }
 0x19e   : > { %v2773_v57 = vpop.eup %2772  ;;  %v2300_v4 = vadd.f32 %v2298_v22, %v2296_v23  ;;  %v2337_v20 = vmul.f32 0.03807363, %v3952_v55  ;;  %v2218_v58 = vadd.f32 %v2216_v45, %v2202_v16  ;;  %v2335_v13 = vadd.f32 %v2333_v15, %v2329_v3 }
 0x19f   : > { %v2217_v21 = vmul.f32 %v4216_v46, %v2205_v59  ;;  %v2087_v50 = vadd.f32 1.0, %v2773_v57  ;;  %v2336_v44 = vadd.f32 %v2334_v30, %v2330_v48  ;;  %v1944_v54 = vrot.slane %v1937_v56, %v4181_v7 }
 0x1a0   : > { %v2775_v41 = vpop.eup %2774  ;;  %v2338_v37 = vmul.f32 0.03807363, %v3954_v32  ;;  %v2341_v1 = vmul.f32 0.12059681, %v2194_v11  ;;  %v2258_v53 = vmul.f32 -0.3212258, %v2218_v58  ;;  %v2339_v19 = vadd.f32 %v2337_v20, %v2335_v13 }
 0x1a1   : > { %v2219_v43 = vadd.f32 %v2217_v21, %v2203_v61  ;;  %v2088_v49 = vadd.f32 1.0, %v2775_v41  ;;  %2776 = vrcp.f32 %v2087_v50  ;;  %v2301_v14 = vmul.f32 0.106909916, %v2218_v58  ;;  %2683 = vst.msk [vmem:[%s3832_s19 + $0x4] ss:$8 sm:$0x3] %vm3287_vm0, %v1944_v54 }
 0x1a2   : > { %v2340_v39 = vadd.f32 %v2338_v37, %v2336_v44  ;;  %v2260_v33 = vadd.f32 %v2258_v53, %v2256_v17  ;;  %v2342_v42 = vmul.f32 0.12059681, %v2195_v10  ;;  %v2343_v5 = vadd.f32 %v2341_v1, %v2339_v19 }
 0x1a3   : > { %v2259_v31 = vmul.f32 -0.3212258, %v2219_v43  ;;  %v2302_v55 = vmul.f32 0.106909916, %v2219_v43  ;;  %2778 = vrcp.f32 %v2088_v49  ;;  %v2303_v63 = vadd.f32 %v2301_v14, %v2299_v60 }
 0x1a4   : > { %v2345_v32 = vmul.f32 0.5649452, %v2218_v58  ;;  %v2344_v11 = vadd.f32 %v2342_v42, %v2340_v39  ;;  %v2346_v40 = vmul.f32 0.5649452, %v2219_v43  ;;  %v2220_v47 = vrot.slane %v3630_v62, 2 }
 0x1a5   : > { %v2261_v12 = vadd.f32 %v2259_v31, %v2257_v38  ;;  %v2304_v29 = vadd.f32 %v2302_v55, %v2300_v4  ;;  %v2221_v18 = vrot.slane %v3632_v2, 2  ;;  %v4217_v10 = vrot.slane %v4212_v0, %v2893_v6 }
 0x1a6   : > { %v2347_v25 = vadd.f32 %v2345_v32, %v2343_v5  ;;  %v2348_v34 = vadd.f32 %v2346_v40, %v2344_v11  ;;  %v4218_v24 = vrot.slane %v4212_v0, %v2907_v9 }
 0x1ab   : > { %v2777_v8 = vpop.eup %2776 }
 0x1ac   : > { %v2226_v52 = vsub.f32 1.0, %v2777_v8  ;;  %v2224_v17 = vmul.f32 %v2777_v8, %v2220_v47 }
 0x1ad   : > { %v2779_v51 = vpop.eup %2778 }
 0x1ae   : > { %v2095_v22 = vcombine.low %v2777_v8, %v2779_v51  ;;  %v2227_v3 = vsub.f32 1.0, %v2779_v51  ;;  %v2238_v38 = vmul.f32 %v4217_v10, %v2226_v52  ;;  %v2225_v16 = vmul.f32 %v2779_v51, %v2221_v18 }
 0x1b0   : > { %v2102_v27 = vrot.slane %v2095_v22, %v4181_v7  ;;  %v2239_v36 = vmul.f32 %v4218_v24, %v2227_v3  ;;  %v2240_v62 = vadd.f32 %v2238_v38, %v2224_v17 }
 0x1b2   : > { %v2109_v48 = vrot.slane %v2102_v27, %v4181_v7  ;;  %v2241_v35 = vadd.f32 %v2239_v36, %v2225_v16  ;;  %v2262_v61 = vmul.f32 0.31633553, %v2240_v62  ;;  %v2305_v2 = vmul.f32 0.21197195, %v2240_v62 }
 0x1b3   : > { %v2349_v59 = vmul.f32 -0.40432772, %v2240_v62 }
 0x1b4   : > { %2684 = vst.msk [vmem:[%s3832_s19 + $0x5] ss:$8 sm:$0x3] %vm3287_vm0, %v2109_v48  ;;  %v2263_v6 = vmul.f32 0.31633553, %v2241_v35  ;;  %v2264_v23 = vadd.f32 %v2262_v61, %v2260_v33  ;;  %v2307_v45 = vadd.f32 %v2305_v2, %v2303_v63 }
 0x1b5   : > { %v2306_v26 = vmul.f32 0.21197195, %v2241_v35  ;;  %v2350_v60 = vmul.f32 -0.40432772, %v2241_v35  ;;  %v2351_v15 = vadd.f32 %v2349_v59, %v2347_v25 }
 0x1b6   : > { %v2265_v30 = vadd.f32 %v2263_v6, %v2261_v12 }
 0x1b7   : > { %v2308_v9 = vadd.f32 %v2306_v26, %v2304_v29  ;;  %v2352_v0 = vadd.f32 %v2350_v60, %v2348_v34 }
 0x1b8   : > { %v2268_v57 = vcombine.low %v2264_v23, %v2265_v30 }
 0x1b9   : > { %v2311_v56 = vcombine.low %v2307_v45, %v2308_v9  ;;  %v2355_v46 = vcombine.low %v2351_v15, %v2352_v0 }
 0x1ba   : > { %v2275_v21 = vrot.slane %v2268_v57, %v4181_v7 }
 0x1bb   : > { %v2318_v4 = vrot.slane %v2311_v56, %v4181_v7  ;;  %v2362_v20 = vrot.slane %v2355_v46, %v4181_v7 }
 0x1bc   : > { %v2282_v50 = vrot.slane %v2275_v21, %v4181_v7 }
 0x1bd   : > { %v2325_v58 = vrot.slane %v2318_v4, %v4181_v7  ;;  %v2369_v13 = vrot.slane %v2362_v20, %v4181_v7 }
 0x1be   : > { %2284 = vst.msk [vmem:[%s563_s25] ss:$4 sm:$0x3] %vm3287_vm0, %v2282_v50 }
 0x1bf   : > { %2685 = vst.msk [vmem:[%s563_s25 + $0x1] ss:$4 sm:$0x3] %vm3287_vm0, %v2325_v58  ;;  %2686 = vst.msk [vmem:[%s563_s25 + $0x2] ss:$4 sm:$0x3] %vm3287_vm0, %v2369_v13 }
 0x1c0 PF: > { %s23_s21 = sadd.s32 1, %s2786_s21  }
 0x1c1   : > { %p20_p4 = scmp.ge.s32.totalorder %s23_s21, 4  }
 0x1c3   :  { %22 = sbr.rel (!%p20_p4) target bundleno = 1 (0x1), region = 160 }

</bundles_post_ra>
